<compile_context>
chip_gen: v5e
topology: v5e:2x2
jax: 0.10.0
libtpu: 0.0.40
codegen_flags: <defaults>
</compile_context>

<pallas_src>
import functools

import jax
import jax.numpy as jnp
from jax.experimental import pallas as pl
from jax.experimental.pallas import tpu as pltpu

EPS = 1e-5  # nn.LayerNorm default


def _layernorm(x, w, b):
    mu = jnp.mean(x, axis=-1, keepdims=True)
    var = jnp.mean((x - mu) ** 2, axis=-1, keepdims=True)
    return (x - mu) * jax.lax.rsqrt(var + EPS) * w + b


def block_kernel(x_ref, ln1w_ref, ln1b_ref, wqkv_ref, wproj_ref, bproj_ref,
                 ln2w_ref, ln2b_ref, w1_ref, b1_ref, w2_ref, b2_ref,
                 o_ref, ctx_ref, *, num_heads, tokens, tokens_padded):
    f32, bf16 = jnp.float32, jnp.bfloat16
    R, D = x_ref.shape                 # R = BT * tokens_padded rows this grid step
    N = tokens_padded
    BT = R // N
    hd = D // num_heads

    x = x_ref[...]                     # (R, D) fp32 residual stream

    # ---------------- Attention branch (pre-LN) ----------------
    xn = _layernorm(x, ln1w_ref[0], ln1b_ref[0])
    qkv = jnp.dot(xn.astype(bf16), wqkv_ref[...],
                  preferred_element_type=f32)              # (R, 3D), fp32 accum
    # single bf16 cast; the 1/sqrt(hd) scale is already folded into the Q weights
    qkv = qkv.astype(bf16)

    if tokens != tokens_padded:        # mask padded keys (static branch)
        kidx = jax.lax.broadcasted_iota(jnp.int32, (1, 1, N), 2)
        key_bias = jnp.where(kidx < tokens, 0.0, -1e30).astype(f32)
    else:
        key_bias = None

    for h in range(num_heads):         # static, unrolled
        lo = h * hd
        q = qkv[:, lo:lo + hd].reshape(BT, N, hd)
        k = qkv[:, D + lo:D + lo + hd].reshape(BT, N, hd)
        v = qkv[:, 2 * D + lo:2 * D + lo + hd].reshape(BT, N, hd)

        # batched QK^T, contracting the last dims directly (no explicit transpose)
        s = jnp.einsum('bqe,bke->bqk', q, k, preferred_element_type=f32)  # (BT,N,N)
        if key_bias is not None:
            s = s + key_bias
        s = s - jnp.max(s, axis=-1, keepdims=True)
        p = jnp.exp(s)
        p = p * pl.reciprocal(jnp.sum(p, axis=-1, keepdims=True), approx=True)

        ctx = jnp.einsum('bqk,bke->bqe', p.astype(bf16), v,
                         preferred_element_type=f32)                       # (BT,N,hd)
        # stage this head's context into the lane-slot of the bf16 scratch
        ctx_ref[:, lo:lo + hd] = ctx.reshape(R, hd).astype(bf16)

    # one full-depth (K = D) output projection on the MXU
    attn = jnp.dot(ctx_ref[...], wproj_ref[...],
                   preferred_element_type=f32) + bproj_ref[0]
    x = x + attn                                            # residual 1

    # ---------------- MLP branch (pre-LN), ReLU6 ----------------
    xn2 = _layernorm(x, ln2w_ref[0], ln2b_ref[0])
    h1 = jnp.clip(jnp.dot(xn2.astype(bf16), w1_ref[...],
                          preferred_element_type=f32) + b1_ref[0],
                  0.0, 6.0).astype(bf16)                    # fused bias+ReLU6+cast
    h2 = jnp.dot(h1, w2_ref[...], preferred_element_type=f32) + b2_ref[0]

    o_ref[...] = x + h2                                     # residual 2


def _prepare_params(params, num_heads):
    """Cast matmul weights to bf16 and fold the attention scale into Q weights."""
    (ln1w, ln1b, wqkv, wproj, bproj, ln2w, ln2b, w1, b1, w2, b2) = params
    D = wproj.shape[0]
    hd = D // num_heads
    scale = hd ** -0.5
    f32, bf16 = jnp.float32, jnp.bfloat16
    wqkv = wqkv.astype(f32).at[:, :D].multiply(scale)       # fold scale into Q cols
    return (ln1w.astype(f32), ln1b.astype(f32),
            wqkv.astype(bf16),
            wproj.astype(bf16),
            bproj.astype(f32),
            ln2w.astype(f32), ln2b.astype(f32),
            w1.astype(bf16), b1.astype(f32),
            w2.astype(bf16), b2.astype(f32))


def _step_vmem_bytes(BT, Np, D, Dm, H):
    """Rough per-grid-step VMEM footprint in bytes (errs on the high side)."""
    R = BT * Np
    io = 2 * (R * D * 4) * 2                                # fp32 in+out slabs, 2-buffered
    weights = 2 * (3 * D * D + D * D + D * Dm + Dm * D)     # bf16 weights, 1-buffered
    weights += 4 * (6 * D + 2 * Dm)                         # LN / bias fp32 vectors
    ctx_scratch = R * D * 2                                 # bf16 context scratch
    act = R * (3 * D * 4 + 3 * D * 2)                       # fp32 + bf16 qkv
    act += R * D * 4 * 4                                    # x / xn / attn / h2 fp32
    act += R * Dm * (4 + 2)                                 # fp32 MLP hidden + bf16 copy
    act += BT * Np * Np * 4 * 3                             # per-head scores / probs
    return io + weights + ctx_scratch + act


def _pick_block_batch(B, Np, D, Dm, H, rows_target, vmem_cap):
    """Batch elements per grid step: fill the MXU M dimension, stay inside VMEM,
    and keep at least 2 grid steps so both TensorCores are used on v7x."""
    budget = min(int(vmem_cap * 0.6), 96 << 20)
    bt = min(B, max(1, -(-rows_target // Np)))
    if B >= 2:
        bt = min(bt, max(1, B // 2))            # guarantee grid >= 2
    while bt > 1 and _step_vmem_bytes(bt, Np, D, Dm, H) > budget:
        bt -= 1
    while B % bt:
        bt -= 1
    return max(bt, 1)


def vit_block(x, params, *, num_heads, rows_per_step=None):
    B, N, D = x.shape
    prepped = _prepare_params(params, num_heads)
    Dm = prepped[7].shape[1]                    # mlp hidden

    # chip-aware sizing
    try:
        vmem_cap = int(getattr(pltpu.get_tpu_info(), "vmem_capacity_bytes", 64 << 20))
    except Exception:
        vmem_cap = 64 << 20
    if rows_per_step is None:
        rows_per_step = 1024 if vmem_cap >= (100 << 20) else 256

    Np = -(-N // 8) * 8                         # pad tokens to a multiple of 8
    BT = _pick_block_batch(B, Np, D, Dm, num_heads, rows_per_step, vmem_cap)
    R = BT * Np
    grid = (B // BT,)

    footprint = _step_vmem_bytes(BT, Np, D, Dm, num_heads)
    vmem_limit = int(min(vmem_cap * 0.9, max(footprint * 1.5, 32 << 20)))

    x2 = x.astype(jnp.float32)
    if Np != N:
        x2 = jnp.pad(x2, ((0, 0), (0, Np - N), (0, 0)))
    x2 = x2.reshape(B * Np, D)

    kernel = functools.partial(block_kernel, num_heads=num_heads,
                               tokens=N, tokens_padded=Np)

    def build(weight_pipeline_mode):
        in_specs = [pl.BlockSpec((R, D), lambda i: (i, 0))]
        for p in prepped:                       # weights: whole array, constant index
            idx = (lambda nd: (lambda i: (0,) * nd))(p.ndim)
            if weight_pipeline_mode is None:
                in_specs.append(pl.BlockSpec(p.shape, idx))
            else:
                in_specs.append(pl.BlockSpec(p.shape, idx,
                                             pipeline_mode=weight_pipeline_mode))
        return pl.pallas_call(
            kernel,
            out_shape=jax.ShapeDtypeStruct((B * Np, D), jnp.float32),
            grid_spec=pltpu.PrefetchScalarGridSpec(
                num_scalar_prefetch=0,
                grid=grid,
                in_specs=in_specs,
                out_specs=pl.BlockSpec((R, D), lambda i: (i, 0)),
                scratch_shapes=[pltpu.VMEM((R, D), jnp.bfloat16)],
            ),
            compiler_params=pltpu.CompilerParams(
                dimension_semantics=("parallel",),
                vmem_limit_bytes=vmem_limit),
        )

    try:
        out2 = build(pl.Buffered(buffer_count=1))(x2, *prepped)
    except Exception:
        # fallback: this jax version rejects single-buffered weight specs
        out2 = build(None)(x2, *prepped)

    out = out2.reshape(B, Np, D)
    if Np != N:
        out = out[:, :N, :]
    return out


def reference(x, params, *, num_heads):
    """Pure-JAX mirror of the kernel math (same bf16 weights / mixed precision)."""
    (ln1w, ln1b, wqkv, wproj, bproj, ln2w, ln2b, w1, b1, w2, b2) = \
        _prepare_params(params, num_heads)
    B, N, D = x.shape
    H = num_heads
    hd = D // H
    f32, bf16 = jnp.float32, jnp.bfloat16

    x2 = x.reshape(B * N, D).astype(f32)
    xn = _layernorm(x2, ln1w[0], ln1b[0])
    qkv = jnp.dot(xn.astype(bf16), wqkv, preferred_element_type=f32).astype(bf16)

    q = qkv[:, :D].reshape(B, N, H, hd).transpose(0, 2, 1, 3)
    k = qkv[:, D:2 * D].reshape(B, N, H, hd).transpose(0, 2, 1, 3)
    v = qkv[:, 2 * D:].reshape(B, N, H, hd).transpose(0, 2, 1, 3)
    s = jnp.einsum('bhqe,bhke->bhqk', q, k, preferred_element_type=f32)
    p = jax.nn.softmax(s, axis=-1)
    ctx = jnp.einsum('bhqk,bhke->bhqe', p.astype(bf16), v, preferred_element_type=f32)
    ctx = ctx.transpose(0, 2, 1, 3).reshape(B * N, D)                       # concat heads
    attn = jnp.dot(ctx.astype(bf16), wproj, preferred_element_type=f32) + bproj[0]
    x2 = x2 + attn

    xn2 = _layernorm(x2, ln2w[0], ln2b[0])
    h1 = jnp.clip(jnp.dot(xn2.astype(bf16), w1, preferred_element_type=f32) + b1[0],
                  0.0, 6.0).astype(bf16)
    h2 = jnp.dot(h1, w2, preferred_element_type=f32) + b2[0]
    return (x2 + h2).reshape(B, N, D)


if __name__ == "__main__":
    B, N, D = 2, 8, 32
    num_heads = 4
    mlp_hidden = int(D * 4.0)

    key = jax.random.PRNGKey(0)
    keys = jax.random.split(key, 8)

    x = jax.random.normal(keys[0], (B, N, D), jnp.float32)

    # deterministic synthetic parameters (weights stored pre-transposed: in x out)
    ln1w = jnp.ones((1, D), jnp.float32)
    ln1b = jnp.zeros((1, D), jnp.float32)
    wqkv = jax.random.normal(keys[1], (D, 3 * D), jnp.float32) * 0.05    # qkv_bias=False
    wproj = jax.random.normal(keys[2], (D, D), jnp.float32) * 0.05
    bproj = jax.random.normal(keys[3], (1, D), jnp.float32) * 0.02
    ln2w = jnp.ones((1, D), jnp.float32)
    ln2b = jnp.zeros((1, D), jnp.float32)
    w1 = jax.random.normal(keys[4], (D, mlp_hidden), jnp.float32) * 0.05
    b1 = jax.random.normal(keys[5], (1, mlp_hidden), jnp.float32) * 0.02
    w2 = jax.random.normal(keys[6], (mlp_hidden, D), jnp.float32) * 0.05
    b2 = jax.random.normal(keys[7], (1, D), jnp.float32) * 0.02

    params = (ln1w, ln1b, wqkv, wproj, bproj, ln2w, ln2b, w1, b1, w2, b2)

    out = jax.block_until_ready(vit_block(x, params, num_heads=num_heads))
    ref = jax.block_until_ready(reference(x, params, num_heads=num_heads))

    assert out.shape == (B, N, D)
    err = jnp.max(jnp.abs(out - ref))
    assert jnp.allclose(out, ref, atol=5e-3, rtol=5e-3), f"mismatch vs reference, max|err|={err}"

    # TODO(synk): Dropout / DropPath with p>0 not implemented (rates are 0.0 -> identity).
    print("KERNEL_OK")
</pallas_src>

<mosaic_0001>
module attributes {stable_mosaic.version = 11 : i64} {
  func.func @block_kernel(%arg0: i32, %arg1: memref<8x32xf32, #tpu.memory_space<vmem>>, %arg2: memref<1x32xf32, #tpu.memory_space<vmem>>, %arg3: memref<1x32xf32, #tpu.memory_space<vmem>>, %arg4: memref<32x96xbf16, #tpu.memory_space<vmem>>, %arg5: memref<32x32xbf16, #tpu.memory_space<vmem>>, %arg6: memref<1x32xf32, #tpu.memory_space<vmem>>, %arg7: memref<1x32xf32, #tpu.memory_space<vmem>>, %arg8: memref<1x32xf32, #tpu.memory_space<vmem>>, %arg9: memref<32x128xbf16, #tpu.memory_space<vmem>>, %arg10: memref<1x128xf32, #tpu.memory_space<vmem>>, %arg11: memref<128x32xbf16, #tpu.memory_space<vmem>>, %arg12: memref<1x32xf32, #tpu.memory_space<vmem>>, %arg13: memref<8x32xf32, #tpu.memory_space<vmem>>, %arg14: memref<8x32xbf16, #tpu.memory_space<vmem>>) attributes {dimension_semantics = [#tpu.dimension_semantics<parallel>], iteration_bounds = array<i64: 2>, scalar_prefetch = 0 : i64, scratch_operands = 1 : i64, tpu.core_type = #tpu.core_type<tc>, window_params = [{transform_indices = @transform_0, window_bounds = array<i64: 8, 32>}, {pipeline_mode = #tpu.pipeline_mode<synchronous>, transform_indices = @transform_1, window_bounds = array<i64: 1, 32>}, {pipeline_mode = #tpu.pipeline_mode<synchronous>, transform_indices = @transform_2, window_bounds = array<i64: 1, 32>}, {pipeline_mode = #tpu.pipeline_mode<synchronous>, transform_indices = @transform_3, window_bounds = array<i64: 32, 96>}, {pipeline_mode = #tpu.pipeline_mode<synchronous>, transform_indices = @transform_4, window_bounds = array<i64: 32, 32>}, {pipeline_mode = #tpu.pipeline_mode<synchronous>, transform_indices = @transform_5, window_bounds = array<i64: 1, 32>}, {pipeline_mode = #tpu.pipeline_mode<synchronous>, transform_indices = @transform_6, window_bounds = array<i64: 1, 32>}, {pipeline_mode = #tpu.pipeline_mode<synchronous>, transform_indices = @transform_7, window_bounds = array<i64: 1, 32>}, {pipeline_mode = #tpu.pipeline_mode<synchronous>, transform_indices = @transform_8, window_bounds = array<i64: 32, 128>}, {pipeline_mode = #tpu.pipeline_mode<synchronous>, transform_indices = @transform_9, window_bounds = array<i64: 1, 128>}, {pipeline_mode = #tpu.pipeline_mode<synchronous>, transform_indices = @transform_10, window_bounds = array<i64: 128, 32>}, {pipeline_mode = #tpu.pipeline_mode<synchronous>, transform_indices = @transform_11, window_bounds = array<i64: 1, 32>}, {transform_indices = @transform_12, window_bounds = array<i64: 8, 32>}]} {
    %c0 = arith.constant 0 : index
    %c0_0 = arith.constant 0 : index
    %0 = vector.load %arg1[%c0, %c0_0] : memref<8x32xf32, #tpu.memory_space<vmem>>, vector<8x32xf32>
    %c0_1 = arith.constant 0 : index
    %c0_2 = arith.constant 0 : index
    %1 = vector.load %arg2[%c0_1, %c0_2] : memref<1x32xf32, #tpu.memory_space<vmem>>, vector<1x32xf32>
    %2 = vector.shape_cast %1 : vector<1x32xf32> to vector<32xf32>
    %c0_3 = arith.constant 0 : index
    %c0_4 = arith.constant 0 : index
    %3 = vector.load %arg3[%c0_3, %c0_4] : memref<1x32xf32, #tpu.memory_space<vmem>>, vector<1x32xf32>
    %4 = vector.shape_cast %3 : vector<1x32xf32> to vector<32xf32>
    %cst = arith.constant dense<0.000000e+00> : vector<8xf32>
    %5 = vector.multi_reduction <add>, %0, %cst [1] : vector<8x32xf32> to vector<8xf32>
    %6 = vector.shape_cast %5 : vector<8xf32> to vector<8x1xf32>
    %cst_5 = arith.constant 3.200000e+01 : f32
    %7 = vector.broadcast %cst_5 : f32 to vector<8x1xf32>
    %8 = arith.divf %6, %7 : vector<8x1xf32>
    %9 = vector.broadcast %8 : vector<8x1xf32> to vector<8x32xf32>
    %10 = arith.subf %0, %9 : vector<8x32xf32>
    %11 = arith.mulf %10, %10 : vector<8x32xf32>
    %cst_6 = arith.constant dense<0.000000e+00> : vector<8xf32>
    %12 = vector.multi_reduction <add>, %11, %cst_6 [1] : vector<8x32xf32> to vector<8xf32>
    %13 = vector.shape_cast %12 : vector<8xf32> to vector<8x1xf32>
    %cst_7 = arith.constant 3.200000e+01 : f32
    %14 = vector.broadcast %cst_7 : f32 to vector<8x1xf32>
    %15 = arith.divf %13, %14 : vector<8x1xf32>
    %16 = vector.broadcast %8 : vector<8x1xf32> to vector<8x32xf32>
    %17 = arith.subf %0, %16 : vector<8x32xf32>
    %cst_8 = arith.constant 9.99999974E-6 : f32
    %18 = vector.broadcast %cst_8 : f32 to vector<8x1xf32>
    %19 = arith.addf %15, %18 : vector<8x1xf32>
    %20 = math.rsqrt %19 : vector<8x1xf32>
    %21 = vector.broadcast %20 : vector<8x1xf32> to vector<8x32xf32>
    %22 = arith.mulf %17, %21 : vector<8x32xf32>
    %23 = vector.shape_cast %2 : vector<32xf32> to vector<1x32xf32>
    %24 = vector.broadcast %23 : vector<1x32xf32> to vector<8x32xf32>
    %25 = arith.mulf %22, %24 : vector<8x32xf32>
    %26 = vector.shape_cast %4 : vector<32xf32> to vector<1x32xf32>
    %27 = vector.broadcast %26 : vector<1x32xf32> to vector<8x32xf32>
    %28 = arith.addf %25, %27 : vector<8x32xf32>
    %29 = arith.truncf %28 : vector<8x32xf32> to vector<8x32xbf16>
    %c0_9 = arith.constant 0 : index
    %c0_10 = arith.constant 0 : index
    %30 = vector.load %arg4[%c0_9, %c0_10] : memref<32x96xbf16, #tpu.memory_space<vmem>>, vector<32x96xbf16>
    %cst_11 = arith.constant dense<0.000000e+00> : vector<8x96xf32>
    %31 = tpu.matmul %29, %30, %cst_11 {dimension_numbers = #tpu.dot_dimension_numbers<[1], [0], [0], [1], [0, 0, 1, 1], [], []>} : vector<8x32xbf16>, vector<32x96xbf16>, vector<8x96xf32> -> vector<8x96xf32>
    %32 = arith.truncf %31 : vector<8x96xf32> to vector<8x96xbf16>
    %33 = vector.extract_strided_slice %32 {offsets = [0, 0], sizes = [8, 8], strides = [1, 1]} : vector<8x96xbf16> to vector<8x8xbf16>
    %34 = vector.shape_cast %33 : vector<8x8xbf16> to vector<1x8x8xbf16>
    %35 = vector.extract_strided_slice %32 {offsets = [0, 32], sizes = [8, 8], strides = [1, 1]} : vector<8x96xbf16> to vector<8x8xbf16>
    %36 = vector.shape_cast %35 : vector<8x8xbf16> to vector<1x8x8xbf16>
    %37 = vector.extract_strided_slice %32 {offsets = [0, 64], sizes = [8, 8], strides = [1, 1]} : vector<8x96xbf16> to vector<8x8xbf16>
    %38 = vector.shape_cast %37 : vector<8x8xbf16> to vector<1x8x8xbf16>
    "tpu.trace_start"() <{level = 10 : i32, message = "bqe,bke->bqk"}> : () -> ()
    %cst_12 = arith.constant dense<0.000000e+00> : vector<1x8x8xf32>
    %39 = tpu.matmul %34, %36, %cst_12 {dimension_numbers = #tpu.dot_dimension_numbers<[2], [2], [1], [1], [0, 0, 0, 1, 1, 1], [0], [0]>} : vector<1x8x8xbf16>, vector<1x8x8xbf16>, vector<1x8x8xf32> -> vector<1x8x8xf32>
    "tpu.trace_stop"() : () -> ()
    %cst_13 = arith.constant dense<0xFF800000> : vector<1x8xf32>
    %40 = vector.multi_reduction <maximumf>, %39, %cst_13 [2] : vector<1x8x8xf32> to vector<1x8xf32>
    %41 = vector.shape_cast %40 : vector<1x8xf32> to vector<1x8x1xf32>
    %42 = vector.broadcast %41 : vector<1x8x1xf32> to vector<1x8x8xf32>
    %43 = arith.subf %39, %42 : vector<1x8x8xf32>
    %44 = math.exp %43 : vector<1x8x8xf32>
    %cst_14 = arith.constant dense<0.000000e+00> : vector<1x8xf32>
    %45 = vector.multi_reduction <add>, %44, %cst_14 [2] : vector<1x8x8xf32> to vector<1x8xf32>
    %46 = vector.shape_cast %45 : vector<1x8xf32> to vector<1x8x1xf32>
    %47 = tpu.reciprocal %46 {approx = true} : vector<1x8x1xf32> -> vector<1x8x1xf32>
    %48 = vector.broadcast %47 : vector<1x8x1xf32> to vector<1x8x8xf32>
    %49 = arith.mulf %44, %48 : vector<1x8x8xf32>
    %50 = arith.truncf %49 : vector<1x8x8xf32> to vector<1x8x8xbf16>
    "tpu.trace_start"() <{level = 10 : i32, message = "bqk,bke->bqe"}> : () -> ()
    %cst_15 = arith.constant dense<0.000000e+00> : vector<1x8x8xf32>
    %51 = tpu.matmul %50, %38, %cst_15 {dimension_numbers = #tpu.dot_dimension_numbers<[2], [1], [1], [2], [0, 0, 0, 1, 1, 2], [0], [0]>} : vector<1x8x8xbf16>, vector<1x8x8xbf16>, vector<1x8x8xf32> -> vector<1x8x8xf32>
    "tpu.trace_stop"() : () -> ()
    %52 = vector.shape_cast %51 : vector<1x8x8xf32> to vector<8x8xf32>
    %53 = arith.truncf %52 : vector<8x8xf32> to vector<8x8xbf16>
    %c0_16 = arith.constant 0 : index
    %c0_17 = arith.constant 0 : index
    %54 = vector.load %arg14[%c0_16, %c0_17] : memref<8x32xbf16, #tpu.memory_space<vmem>>, vector<8x8xbf16>
    tpu.vector_store %arg14[%c0_16, %c0_17], %53 {strides = array<i32>} : memref<8x32xbf16, #tpu.memory_space<vmem>>, vector<8x8xbf16>,
    %55 = vector.extract_strided_slice %32 {offsets = [0, 8], sizes = [8, 8], strides = [1, 1]} : vector<8x96xbf16> to vector<8x8xbf16>
    %56 = vector.shape_cast %55 : vector<8x8xbf16> to vector<1x8x8xbf16>
    %57 = vector.extract_strided_slice %32 {offsets = [0, 40], sizes = [8, 8], strides = [1, 1]} : vector<8x96xbf16> to vector<8x8xbf16>
    %58 = vector.shape_cast %57 : vector<8x8xbf16> to vector<1x8x8xbf16>
    %59 = vector.extract_strided_slice %32 {offsets = [0, 72], sizes = [8, 8], strides = [1, 1]} : vector<8x96xbf16> to vector<8x8xbf16>
    %60 = vector.shape_cast %59 : vector<8x8xbf16> to vector<1x8x8xbf16>
    "tpu.trace_start"() <{level = 10 : i32, message = "bqe,bke->bqk"}> : () -> ()
    %cst_18 = arith.constant dense<0.000000e+00> : vector<1x8x8xf32>
    %61 = tpu.matmul %56, %58, %cst_18 {dimension_numbers = #tpu.dot_dimension_numbers<[2], [2], [1], [1], [0, 0, 0, 1, 1, 1], [0], [0]>} : vector<1x8x8xbf16>, vector<1x8x8xbf16>, vector<1x8x8xf32> -> vector<1x8x8xf32>
    "tpu.trace_stop"() : () -> ()
    %cst_19 = arith.constant dense<0xFF800000> : vector<1x8xf32>
    %62 = vector.multi_reduction <maximumf>, %61, %cst_19 [2] : vector<1x8x8xf32> to vector<1x8xf32>
    %63 = vector.shape_cast %62 : vector<1x8xf32> to vector<1x8x1xf32>
    %64 = vector.broadcast %63 : vector<1x8x1xf32> to vector<1x8x8xf32>
    %65 = arith.subf %61, %64 : vector<1x8x8xf32>
    %66 = math.exp %65 : vector<1x8x8xf32>
    %cst_20 = arith.constant dense<0.000000e+00> : vector<1x8xf32>
    %67 = vector.multi_reduction <add>, %66, %cst_20 [2] : vector<1x8x8xf32> to vector<1x8xf32>
    %68 = vector.shape_cast %67 : vector<1x8xf32> to vector<1x8x1xf32>
    %69 = tpu.reciprocal %68 {approx = true} : vector<1x8x1xf32> -> vector<1x8x1xf32>
    %70 = vector.broadcast %69 : vector<1x8x1xf32> to vector<1x8x8xf32>
    %71 = arith.mulf %66, %70 : vector<1x8x8xf32>
    %72 = arith.truncf %71 : vector<1x8x8xf32> to vector<1x8x8xbf16>
    "tpu.trace_start"() <{level = 10 : i32, message = "bqk,bke->bqe"}> : () -> ()
    %cst_21 = arith.constant dense<0.000000e+00> : vector<1x8x8xf32>
    %73 = tpu.matmul %72, %60, %cst_21 {dimension_numbers = #tpu.dot_dimension_numbers<[2], [1], [1], [2], [0, 0, 0, 1, 1, 2], [0], [0]>} : vector<1x8x8xbf16>, vector<1x8x8xbf16>, vector<1x8x8xf32> -> vector<1x8x8xf32>
    "tpu.trace_stop"() : () -> ()
    %74 = vector.shape_cast %73 : vector<1x8x8xf32> to vector<8x8xf32>
    %75 = arith.truncf %74 : vector<8x8xf32> to vector<8x8xbf16>
    %c0_22 = arith.constant 0 : index
    %c8 = arith.constant 8 : index
    %76 = vector.load %arg14[%c0_22, %c8] : memref<8x32xbf16, #tpu.memory_space<vmem>>, vector<8x8xbf16>
    tpu.vector_store %arg14[%c0_22, %c8], %75 {strides = array<i32>} : memref<8x32xbf16, #tpu.memory_space<vmem>>, vector<8x8xbf16>,
    %77 = vector.extract_strided_slice %32 {offsets = [0, 16], sizes = [8, 8], strides = [1, 1]} : vector<8x96xbf16> to vector<8x8xbf16>
    %78 = vector.shape_cast %77 : vector<8x8xbf16> to vector<1x8x8xbf16>
    %79 = vector.extract_strided_slice %32 {offsets = [0, 48], sizes = [8, 8], strides = [1, 1]} : vector<8x96xbf16> to vector<8x8xbf16>
    %80 = vector.shape_cast %79 : vector<8x8xbf16> to vector<1x8x8xbf16>
    %81 = vector.extract_strided_slice %32 {offsets = [0, 80], sizes = [8, 8], strides = [1, 1]} : vector<8x96xbf16> to vector<8x8xbf16>
    %82 = vector.shape_cast %81 : vector<8x8xbf16> to vector<1x8x8xbf16>
    "tpu.trace_start"() <{level = 10 : i32, message = "bqe,bke->bqk"}> : () -> ()
    %cst_23 = arith.constant dense<0.000000e+00> : vector<1x8x8xf32>
    %83 = tpu.matmul %78, %80, %cst_23 {dimension_numbers = #tpu.dot_dimension_numbers<[2], [2], [1], [1], [0, 0, 0, 1, 1, 1], [0], [0]>} : vector<1x8x8xbf16>, vector<1x8x8xbf16>, vector<1x8x8xf32> -> vector<1x8x8xf32>
    "tpu.trace_stop"() : () -> ()
    %cst_24 = arith.constant dense<0xFF800000> : vector<1x8xf32>
    %84 = vector.multi_reduction <maximumf>, %83, %cst_24 [2] : vector<1x8x8xf32> to vector<1x8xf32>
    %85 = vector.shape_cast %84 : vector<1x8xf32> to vector<1x8x1xf32>
    %86 = vector.broadcast %85 : vector<1x8x1xf32> to vector<1x8x8xf32>
    %87 = arith.subf %83, %86 : vector<1x8x8xf32>
    %88 = math.exp %87 : vector<1x8x8xf32>
    %cst_25 = arith.constant dense<0.000000e+00> : vector<1x8xf32>
    %89 = vector.multi_reduction <add>, %88, %cst_25 [2] : vector<1x8x8xf32> to vector<1x8xf32>
    %90 = vector.shape_cast %89 : vector<1x8xf32> to vector<1x8x1xf32>
    %91 = tpu.reciprocal %90 {approx = true} : vector<1x8x1xf32> -> vector<1x8x1xf32>
    %92 = vector.broadcast %91 : vector<1x8x1xf32> to vector<1x8x8xf32>
    %93 = arith.mulf %88, %92 : vector<1x8x8xf32>
    %94 = arith.truncf %93 : vector<1x8x8xf32> to vector<1x8x8xbf16>
    "tpu.trace_start"() <{level = 10 : i32, message = "bqk,bke->bqe"}> : () -> ()
    %cst_26 = arith.constant dense<0.000000e+00> : vector<1x8x8xf32>
    %95 = tpu.matmul %94, %82, %cst_26 {dimension_numbers = #tpu.dot_dimension_numbers<[2], [1], [1], [2], [0, 0, 0, 1, 1, 2], [0], [0]>} : vector<1x8x8xbf16>, vector<1x8x8xbf16>, vector<1x8x8xf32> -> vector<1x8x8xf32>
    "tpu.trace_stop"() : () -> ()
    %96 = vector.shape_cast %95 : vector<1x8x8xf32> to vector<8x8xf32>
    %97 = arith.truncf %96 : vector<8x8xf32> to vector<8x8xbf16>
    %c0_27 = arith.constant 0 : index
    %c16 = arith.constant 16 : index
    %98 = vector.load %arg14[%c0_27, %c16] : memref<8x32xbf16, #tpu.memory_space<vmem>>, vector<8x8xbf16>
    tpu.vector_store %arg14[%c0_27, %c16], %97 {strides = array<i32>} : memref<8x32xbf16, #tpu.memory_space<vmem>>, vector<8x8xbf16>,
    %99 = vector.extract_strided_slice %32 {offsets = [0, 24], sizes = [8, 8], strides = [1, 1]} : vector<8x96xbf16> to vector<8x8xbf16>
    %100 = vector.shape_cast %99 : vector<8x8xbf16> to vector<1x8x8xbf16>
    %101 = vector.extract_strided_slice %32 {offsets = [0, 56], sizes = [8, 8], strides = [1, 1]} : vector<8x96xbf16> to vector<8x8xbf16>
    %102 = vector.shape_cast %101 : vector<8x8xbf16> to vector<1x8x8xbf16>
    %103 = vector.extract_strided_slice %32 {offsets = [0, 88], sizes = [8, 8], strides = [1, 1]} : vector<8x96xbf16> to vector<8x8xbf16>
    %104 = vector.shape_cast %103 : vector<8x8xbf16> to vector<1x8x8xbf16>
    "tpu.trace_start"() <{level = 10 : i32, message = "bqe,bke->bqk"}> : () -> ()
    %cst_28 = arith.constant dense<0.000000e+00> : vector<1x8x8xf32>
    %105 = tpu.matmul %100, %102, %cst_28 {dimension_numbers = #tpu.dot_dimension_numbers<[2], [2], [1], [1], [0, 0, 0, 1, 1, 1], [0], [0]>} : vector<1x8x8xbf16>, vector<1x8x8xbf16>, vector<1x8x8xf32> -> vector<1x8x8xf32>
    "tpu.trace_stop"() : () -> ()
    %cst_29 = arith.constant dense<0xFF800000> : vector<1x8xf32>
    %106 = vector.multi_reduction <maximumf>, %105, %cst_29 [2] : vector<1x8x8xf32> to vector<1x8xf32>
    %107 = vector.shape_cast %106 : vector<1x8xf32> to vector<1x8x1xf32>
    %108 = vector.broadcast %107 : vector<1x8x1xf32> to vector<1x8x8xf32>
    %109 = arith.subf %105, %108 : vector<1x8x8xf32>
    %110 = math.exp %109 : vector<1x8x8xf32>
    %cst_30 = arith.constant dense<0.000000e+00> : vector<1x8xf32>
    %111 = vector.multi_reduction <add>, %110, %cst_30 [2] : vector<1x8x8xf32> to vector<1x8xf32>
    %112 = vector.shape_cast %111 : vector<1x8xf32> to vector<1x8x1xf32>
    %113 = tpu.reciprocal %112 {approx = true} : vector<1x8x1xf32> -> vector<1x8x1xf32>
    %114 = vector.broadcast %113 : vector<1x8x1xf32> to vector<1x8x8xf32>
    %115 = arith.mulf %110, %114 : vector<1x8x8xf32>
    %116 = arith.truncf %115 : vector<1x8x8xf32> to vector<1x8x8xbf16>
    "tpu.trace_start"() <{level = 10 : i32, message = "bqk,bke->bqe"}> : () -> ()
    %cst_31 = arith.constant dense<0.000000e+00> : vector<1x8x8xf32>
    %117 = tpu.matmul %116, %104, %cst_31 {dimension_numbers = #tpu.dot_dimension_numbers<[2], [1], [1], [2], [0, 0, 0, 1, 1, 2], [0], [0]>} : vector<1x8x8xbf16>, vector<1x8x8xbf16>, vector<1x8x8xf32> -> vector<1x8x8xf32>
    "tpu.trace_stop"() : () -> ()
    %118 = vector.shape_cast %117 : vector<1x8x8xf32> to vector<8x8xf32>
    %119 = arith.truncf %118 : vector<8x8xf32> to vector<8x8xbf16>
    %c0_32 = arith.constant 0 : index
    %c24 = arith.constant 24 : index
    %120 = vector.load %arg14[%c0_32, %c24] : memref<8x32xbf16, #tpu.memory_space<vmem>>, vector<8x8xbf16>
    tpu.vector_store %arg14[%c0_32, %c24], %119 {strides = array<i32>} : memref<8x32xbf16, #tpu.memory_space<vmem>>, vector<8x8xbf16>,
    %c0_33 = arith.constant 0 : index
    %c0_34 = arith.constant 0 : index
    %121 = vector.load %arg14[%c0_33, %c0_34] : memref<8x32xbf16, #tpu.memory_space<vmem>>, vector<8x32xbf16>
    %c0_35 = arith.constant 0 : index
    %c0_36 = arith.constant 0 : index
    %122 = vector.load %arg5[%c0_35, %c0_36] : memref<32x32xbf16, #tpu.memory_space<vmem>>, vector<32x32xbf16>
    %cst_37 = arith.constant dense<0.000000e+00> : vector<8x32xf32>
    %123 = tpu.matmul %121, %122, %cst_37 {dimension_numbers = #tpu.dot_dimension_numbers<[1], [0], [0], [1], [0, 0, 1, 1], [], []>} : vector<8x32xbf16>, vector<32x32xbf16>, vector<8x32xf32> -> vector<8x32xf32>
    %c0_38 = arith.constant 0 : index
    %c0_39 = arith.constant 0 : index
    %124 = vector.load %arg6[%c0_38, %c0_39] : memref<1x32xf32, #tpu.memory_space<vmem>>, vector<1x32xf32>
    %125 = vector.shape_cast %124 : vector<1x32xf32> to vector<32xf32>
    %126 = vector.shape_cast %125 : vector<32xf32> to vector<1x32xf32>
    %127 = vector.broadcast %126 : vector<1x32xf32> to vector<8x32xf32>
    %128 = arith.addf %123, %127 : vector<8x32xf32>
    %129 = arith.addf %0, %128 : vector<8x32xf32>
    %c0_40 = arith.constant 0 : index
    %c0_41 = arith.constant 0 : index
    %130 = vector.load %arg7[%c0_40, %c0_41] : memref<1x32xf32, #tpu.memory_space<vmem>>, vector<1x32xf32>
    %131 = vector.shape_cast %130 : vector<1x32xf32> to vector<32xf32>
    %c0_42 = arith.constant 0 : index
    %c0_43 = arith.constant 0 : index
    %132 = vector.load %arg8[%c0_42, %c0_43] : memref<1x32xf32, #tpu.memory_space<vmem>>, vector<1x32xf32>
    %133 = vector.shape_cast %132 : vector<1x32xf32> to vector<32xf32>
    %cst_44 = arith.constant dense<0.000000e+00> : vector<8xf32>
    %134 = vector.multi_reduction <add>, %129, %cst_44 [1] : vector<8x32xf32> to vector<8xf32>
    %135 = vector.shape_cast %134 : vector<8xf32> to vector<8x1xf32>
    %cst_45 = arith.constant 3.200000e+01 : f32
    %136 = vector.broadcast %cst_45 : f32 to vector<8x1xf32>
    %137 = arith.divf %135, %136 : vector<8x1xf32>
    %138 = vector.broadcast %137 : vector<8x1xf32> to vector<8x32xf32>
    %139 = arith.subf %129, %138 : vector<8x32xf32>
    %140 = arith.mulf %139, %139 : vector<8x32xf32>
    %cst_46 = arith.constant dense<0.000000e+00> : vector<8xf32>
    %141 = vector.multi_reduction <add>, %140, %cst_46 [1] : vector<8x32xf32> to vector<8xf32>
    %142 = vector.shape_cast %141 : vector<8xf32> to vector<8x1xf32>
    %cst_47 = arith.constant 3.200000e+01 : f32
    %143 = vector.broadcast %cst_47 : f32 to vector<8x1xf32>
    %144 = arith.divf %142, %143 : vector<8x1xf32>
    %145 = vector.broadcast %137 : vector<8x1xf32> to vector<8x32xf32>
    %146 = arith.subf %129, %145 : vector<8x32xf32>
    %cst_48 = arith.constant 9.99999974E-6 : f32
    %147 = vector.broadcast %cst_48 : f32 to vector<8x1xf32>
    %148 = arith.addf %144, %147 : vector<8x1xf32>
    %149 = math.rsqrt %148 : vector<8x1xf32>
    %150 = vector.broadcast %149 : vector<8x1xf32> to vector<8x32xf32>
    %151 = arith.mulf %146, %150 : vector<8x32xf32>
    %152 = vector.shape_cast %131 : vector<32xf32> to vector<1x32xf32>
    %153 = vector.broadcast %152 : vector<1x32xf32> to vector<8x32xf32>
    %154 = arith.mulf %151, %153 : vector<8x32xf32>
    %155 = vector.shape_cast %133 : vector<32xf32> to vector<1x32xf32>
    %156 = vector.broadcast %155 : vector<1x32xf32> to vector<8x32xf32>
    %157 = arith.addf %154, %156 : vector<8x32xf32>
    %158 = arith.truncf %157 : vector<8x32xf32> to vector<8x32xbf16>
    %c0_49 = arith.constant 0 : index
    %c0_50 = arith.constant 0 : index
    %159 = vector.load %arg9[%c0_49, %c0_50] : memref<32x128xbf16, #tpu.memory_space<vmem>>, vector<32x128xbf16>
    %cst_51 = arith.constant dense<0.000000e+00> : vector<8x128xf32>
    %160 = tpu.matmul %158, %159, %cst_51 {dimension_numbers = #tpu.dot_dimension_numbers<[1], [0], [0], [1], [0, 0, 1, 1], [], []>} : vector<8x32xbf16>, vector<32x128xbf16>, vector<8x128xf32> -> vector<8x128xf32>
    %c0_52 = arith.constant 0 : index
    %c0_53 = arith.constant 0 : index
    %161 = vector.load %arg10[%c0_52, %c0_53] : memref<1x128xf32, #tpu.memory_space<vmem>>, vector<1x128xf32>
    %162 = vector.shape_cast %161 : vector<1x128xf32> to vector<128xf32>
    %163 = vector.shape_cast %162 : vector<128xf32> to vector<1x128xf32>
    %164 = vector.broadcast %163 : vector<1x128xf32> to vector<8x128xf32>
    %165 = arith.addf %160, %164 : vector<8x128xf32>
    %cst_54 = arith.constant 0.000000e+00 : f32
    %cst_55 = arith.constant 6.000000e+00 : f32
    %166 = vector.broadcast %cst_54 : f32 to vector<8x128xf32>
    %167 = arith.maximumf %166, %165 : vector<8x128xf32>
    %168 = vector.broadcast %cst_55 : f32 to vector<8x128xf32>
    %169 = arith.minimumf %168, %167 : vector<8x128xf32>
    %170 = arith.truncf %169 : vector<8x128xf32> to vector<8x128xbf16>
    %c0_56 = arith.constant 0 : index
    %c0_57 = arith.constant 0 : index
    %171 = vector.load %arg11[%c0_56, %c0_57] : memref<128x32xbf16, #tpu.memory_space<vmem>>, vector<128x32xbf16>
    %cst_58 = arith.constant dense<0.000000e+00> : vector<8x32xf32>
    %172 = tpu.matmul %170, %171, %cst_58 {dimension_numbers = #tpu.dot_dimension_numbers<[1], [0], [0], [1], [0, 0, 1, 1], [], []>} : vector<8x128xbf16>, vector<128x32xbf16>, vector<8x32xf32> -> vector<8x32xf32>
    %c0_59 = arith.constant 0 : index
    %c0_60 = arith.constant 0 : index
    %173 = vector.load %arg12[%c0_59, %c0_60] : memref<1x32xf32, #tpu.memory_space<vmem>>, vector<1x32xf32>
    %174 = vector.shape_cast %173 : vector<1x32xf32> to vector<32xf32>
    %175 = vector.shape_cast %174 : vector<32xf32> to vector<1x32xf32>
    %176 = vector.broadcast %175 : vector<1x32xf32> to vector<8x32xf32>
    %177 = arith.addf %172, %176 : vector<8x32xf32>
    %178 = arith.addf %129, %177 : vector<8x32xf32>
    %c0_61 = arith.constant 0 : index
    %c0_62 = arith.constant 0 : index
    %179 = vector.load %arg13[%c0_61, %c0_62] : memref<8x32xf32, #tpu.memory_space<vmem>>, vector<8x32xf32>
    tpu.vector_store %arg13[%c0_61, %c0_62], %178 {strides = array<i32>} : memref<8x32xf32, #tpu.memory_space<vmem>>, vector<8x32xf32>,
    return
  }
  func.func @transform_0(%arg0: i32) -> (i32, i32) {
    %c0_i32 = arith.constant 0 : i32
    %c0_i32_0 = arith.constant 0 : i32
    return %arg0, %c0_i32 : i32, i32
  }
  func.func @transform_1(%arg0: i32) -> (i32, i32) {
    %c0_i32 = arith.constant 0 : i32
    %c0_i32_0 = arith.constant 0 : i32
    %c0_i32_1 = arith.constant 0 : i32
    return %c0_i32, %c0_i32_0 : i32, i32
  }
  func.func @transform_2(%arg0: i32) -> (i32, i32) {
    %c0_i32 = arith.constant 0 : i32
    %c0_i32_0 = arith.constant 0 : i32
    %c0_i32_1 = arith.constant 0 : i32
    return %c0_i32, %c0_i32_0 : i32, i32
  }
  func.func @transform_3(%arg0: i32) -> (i32, i32) {
    %c0_i32 = arith.constant 0 : i32
    %c0_i32_0 = arith.constant 0 : i32
    %c0_i32_1 = arith.constant 0 : i32
    return %c0_i32, %c0_i32_0 : i32, i32
  }
  func.func @transform_4(%arg0: i32) -> (i32, i32) {
    %c0_i32 = arith.constant 0 : i32
    %c0_i32_0 = arith.constant 0 : i32
    %c0_i32_1 = arith.constant 0 : i32
    return %c0_i32, %c0_i32_0 : i32, i32
  }
  func.func @transform_5(%arg0: i32) -> (i32, i32) {
    %c0_i32 = arith.constant 0 : i32
    %c0_i32_0 = arith.constant 0 : i32
    %c0_i32_1 = arith.constant 0 : i32
    return %c0_i32, %c0_i32_0 : i32, i32
  }
  func.func @transform_6(%arg0: i32) -> (i32, i32) {
    %c0_i32 = arith.constant 0 : i32
    %c0_i32_0 = arith.constant 0 : i32
    %c0_i32_1 = arith.constant 0 : i32
    return %c0_i32, %c0_i32_0 : i32, i32
  }
  func.func @transform_7(%arg0: i32) -> (i32, i32) {
    %c0_i32 = arith.constant 0 : i32
    %c0_i32_0 = arith.constant 0 : i32
    %c0_i32_1 = arith.constant 0 : i32
    return %c0_i32, %c0_i32_0 : i32, i32
  }
  func.func @transform_8(%arg0: i32) -> (i32, i32) {
    %c0_i32 = arith.constant 0 : i32
    %c0_i32_0 = arith.constant 0 : i32
    %c0_i32_1 = arith.constant 0 : i32
    return %c0_i32, %c0_i32_0 : i32, i32
  }
  func.func @transform_9(%arg0: i32) -> (i32, i32) {
    %c0_i32 = arith.constant 0 : i32
    %c0_i32_0 = arith.constant 0 : i32
    %c0_i32_1 = arith.constant 0 : i32
    return %c0_i32, %c0_i32_0 : i32, i32
  }
  func.func @transform_10(%arg0: i32) -> (i32, i32) {
    %c0_i32 = arith.constant 0 : i32
    %c0_i32_0 = arith.constant 0 : i32
    %c0_i32_1 = arith.constant 0 : i32
    return %c0_i32, %c0_i32_0 : i32, i32
  }
  func.func @transform_11(%arg0: i32) -> (i32, i32) {
    %c0_i32 = arith.constant 0 : i32
    %c0_i32_0 = arith.constant 0 : i32
    %c0_i32_1 = arith.constant 0 : i32
    return %c0_i32, %c0_i32_0 : i32, i32
  }
  func.func @transform_12(%arg0: i32) -> (i32, i32) {
    %c0_i32 = arith.constant 0 : i32
    %c0_i32_0 = arith.constant 0 : i32
    return %arg0, %c0_i32 : i32, i32
  }
}

module attributes {stable_mosaic.version = 11 : i64} {
  func.func @block_kernel(%arg0: i32, %arg1: memref<8x32xf32, #tpu.memory_space<vmem>>, %arg2: memref<1x32xf32, #tpu.memory_space<vmem>>, %arg3: memref<1x32xf32, #tpu.memory_space<vmem>>, %arg4: memref<32x96xbf16, #tpu.memory_space<vmem>>, %arg5: memref<32x32xbf16, #tpu.memory_space<vmem>>, %arg6: memref<1x32xf32, #tpu.memory_space<vmem>>, %arg7: memref<1x32xf32, #tpu.memory_space<vmem>>, %arg8: memref<1x32xf32, #tpu.memory_space<vmem>>, %arg9: memref<32x128xbf16, #tpu.memory_space<vmem>>, %arg10: memref<1x128xf32, #tpu.memory_space<vmem>>, %arg11: memref<128x32xbf16, #tpu.memory_space<vmem>>, %arg12: memref<1x32xf32, #tpu.memory_space<vmem>>, %arg13: memref<8x32xf32, #tpu.memory_space<vmem>>, %arg14: memref<8x32xbf16, #tpu.memory_space<vmem>>) attributes {dimension_semantics = [#tpu.dimension_semantics<parallel>], iteration_bounds = array<i64: 2>, scalar_prefetch = 0 : i64, scratch_operands = 1 : i64, tpu.core_type = #tpu.core_type<tc>, window_params = [{transform_indices = @transform_0, window_bounds = array<i64: 8, 32>}, {pipeline_mode = #tpu.pipeline_mode<synchronous>, transform_indices = @transform_1, window_bounds = array<i64: 1, 32>}, {pipeline_mode = #tpu.pipeline_mode<synchronous>, transform_indices = @transform_2, window_bounds = array<i64: 1, 32>}, {pipeline_mode = #tpu.pipeline_mode<synchronous>, transform_indices = @transform_3, window_bounds = array<i64: 32, 96>}, {pipeline_mode = #tpu.pipeline_mode<synchronous>, transform_indices = @transform_4, window_bounds = array<i64: 32, 32>}, {pipeline_mode = #tpu.pipeline_mode<synchronous>, transform_indices = @transform_5, window_bounds = array<i64: 1, 32>}, {pipeline_mode = #tpu.pipeline_mode<synchronous>, transform_indices = @transform_6, window_bounds = array<i64: 1, 32>}, {pipeline_mode = #tpu.pipeline_mode<synchronous>, transform_indices = @transform_7, window_bounds = array<i64: 1, 32>}, {pipeline_mode = #tpu.pipeline_mode<synchronous>, transform_indices = @transform_8, window_bounds = array<i64: 32, 128>}, {pipeline_mode = #tpu.pipeline_mode<synchronous>, transform_indices = @transform_9, window_bounds = array<i64: 1, 128>}, {pipeline_mode = #tpu.pipeline_mode<synchronous>, transform_indices = @transform_10, window_bounds = array<i64: 128, 32>}, {pipeline_mode = #tpu.pipeline_mode<synchronous>, transform_indices = @transform_11, window_bounds = array<i64: 1, 32>}, {transform_indices = @transform_12, window_bounds = array<i64: 8, 32>}]} {
    %c0 = arith.constant 0 : index
    %c0_0 = arith.constant 0 : index
    %0 = vector.load %arg1[%c0, %c0_0] : memref<8x32xf32, #tpu.memory_space<vmem>>, vector<8x32xf32>
    %c0_1 = arith.constant 0 : index
    %c0_2 = arith.constant 0 : index
    %1 = vector.load %arg2[%c0_1, %c0_2] : memref<1x32xf32, #tpu.memory_space<vmem>>, vector<1x32xf32>
    %2 = vector.shape_cast %1 : vector<1x32xf32> to vector<32xf32>
    %c0_3 = arith.constant 0 : index
    %c0_4 = arith.constant 0 : index
    %3 = vector.load %arg3[%c0_3, %c0_4] : memref<1x32xf32, #tpu.memory_space<vmem>>, vector<1x32xf32>
    %4 = vector.shape_cast %3 : vector<1x32xf32> to vector<32xf32>
    %cst = arith.constant dense<0.000000e+00> : vector<8xf32>
    %5 = vector.multi_reduction <add>, %0, %cst [1] : vector<8x32xf32> to vector<8xf32>
    %6 = vector.shape_cast %5 : vector<8xf32> to vector<8x1xf32>
    %cst_5 = arith.constant 3.200000e+01 : f32
    %7 = vector.broadcast %cst_5 : f32 to vector<8x1xf32>
    %8 = arith.divf %6, %7 : vector<8x1xf32>
    %9 = vector.broadcast %8 : vector<8x1xf32> to vector<8x32xf32>
    %10 = arith.subf %0, %9 : vector<8x32xf32>
    %11 = arith.mulf %10, %10 : vector<8x32xf32>
    %cst_6 = arith.constant dense<0.000000e+00> : vector<8xf32>
    %12 = vector.multi_reduction <add>, %11, %cst_6 [1] : vector<8x32xf32> to vector<8xf32>
    %13 = vector.shape_cast %12 : vector<8xf32> to vector<8x1xf32>
    %cst_7 = arith.constant 3.200000e+01 : f32
    %14 = vector.broadcast %cst_7 : f32 to vector<8x1xf32>
    %15 = arith.divf %13, %14 : vector<8x1xf32>
    %16 = vector.broadcast %8 : vector<8x1xf32> to vector<8x32xf32>
    %17 = arith.subf %0, %16 : vector<8x32xf32>
    %cst_8 = arith.constant 9.99999974E-6 : f32
    %18 = vector.broadcast %cst_8 : f32 to vector<8x1xf32>
    %19 = arith.addf %15, %18 : vector<8x1xf32>
    %20 = math.rsqrt %19 : vector<8x1xf32>
    %21 = vector.broadcast %20 : vector<8x1xf32> to vector<8x32xf32>
    %22 = arith.mulf %17, %21 : vector<8x32xf32>
    %23 = vector.shape_cast %2 : vector<32xf32> to vector<1x32xf32>
    %24 = vector.broadcast %23 : vector<1x32xf32> to vector<8x32xf32>
    %25 = arith.mulf %22, %24 : vector<8x32xf32>
    %26 = vector.shape_cast %4 : vector<32xf32> to vector<1x32xf32>
    %27 = vector.broadcast %26 : vector<1x32xf32> to vector<8x32xf32>
    %28 = arith.addf %25, %27 : vector<8x32xf32>
    %29 = arith.truncf %28 : vector<8x32xf32> to vector<8x32xbf16>
    %c0_9 = arith.constant 0 : index
    %c0_10 = arith.constant 0 : index
    %30 = vector.load %arg4[%c0_9, %c0_10] : memref<32x96xbf16, #tpu.memory_space<vmem>>, vector<32x96xbf16>
    %cst_11 = arith.constant dense<0.000000e+00> : vector<8x96xf32>
    %31 = tpu.matmul %29, %30, %cst_11 {dimension_numbers = #tpu.dot_dimension_numbers<[1], [0], [0], [1], [0, 0, 1, 1], [], []>} : vector<8x32xbf16>, vector<32x96xbf16>, vector<8x96xf32> -> vector<8x96xf32>
    %32 = arith.truncf %31 : vector<8x96xf32> to vector<8x96xbf16>
    %33 = vector.extract_strided_slice %32 {offsets = [0, 0], sizes = [8, 8], strides = [1, 1]} : vector<8x96xbf16> to vector<8x8xbf16>
    %34 = vector.shape_cast %33 : vector<8x8xbf16> to vector<1x8x8xbf16>
    %35 = vector.extract_strided_slice %32 {offsets = [0, 32], sizes = [8, 8], strides = [1, 1]} : vector<8x96xbf16> to vector<8x8xbf16>
    %36 = vector.shape_cast %35 : vector<8x8xbf16> to vector<1x8x8xbf16>
    %37 = vector.extract_strided_slice %32 {offsets = [0, 64], sizes = [8, 8], strides = [1, 1]} : vector<8x96xbf16> to vector<8x8xbf16>
    %38 = vector.shape_cast %37 : vector<8x8xbf16> to vector<1x8x8xbf16>
    "tpu.trace_start"() <{level = 10 : i32, message = "bqe,bke->bqk"}> : () -> ()
    %cst_12 = arith.constant dense<0.000000e+00> : vector<1x8x8xf32>
    %39 = tpu.matmul %34, %36, %cst_12 {dimension_numbers = #tpu.dot_dimension_numbers<[2], [2], [1], [1], [0, 0, 0, 1, 1, 1], [0], [0]>} : vector<1x8x8xbf16>, vector<1x8x8xbf16>, vector<1x8x8xf32> -> vector<1x8x8xf32>
    "tpu.trace_stop"() : () -> ()
    %cst_13 = arith.constant dense<0xFF800000> : vector<1x8xf32>
    %40 = vector.multi_reduction <maximumf>, %39, %cst_13 [2] : vector<1x8x8xf32> to vector<1x8xf32>
    %41 = vector.shape_cast %40 : vector<1x8xf32> to vector<1x8x1xf32>
    %42 = vector.broadcast %41 : vector<1x8x1xf32> to vector<1x8x8xf32>
    %43 = arith.subf %39, %42 : vector<1x8x8xf32>
    %44 = math.exp %43 : vector<1x8x8xf32>
    %cst_14 = arith.constant dense<0.000000e+00> : vector<1x8xf32>
    %45 = vector.multi_reduction <add>, %44, %cst_14 [2] : vector<1x8x8xf32> to vector<1x8xf32>
    %46 = vector.shape_cast %45 : vector<1x8xf32> to vector<1x8x1xf32>
    %47 = tpu.reciprocal %46 {approx = true} : vector<1x8x1xf32> -> vector<1x8x1xf32>
    %48 = vector.broadcast %47 : vector<1x8x1xf32> to vector<1x8x8xf32>
    %49 = arith.mulf %44, %48 : vector<1x8x8xf32>
    %50 = arith.truncf %49 : vector<1x8x8xf32> to vector<1x8x8xbf16>
    "tpu.trace_start"() <{level = 10 : i32, message = "bqk,bke->bqe"}> : () -> ()
    %cst_15 = arith.constant dense<0.000000e+00> : vector<1x8x8xf32>
    %51 = tpu.matmul %50, %38, %cst_15 {dimension_numbers = #tpu.dot_dimension_numbers<[2], [1], [1], [2], [0, 0, 0, 1, 1, 2], [0], [0]>} : vector<1x8x8xbf16>, vector<1x8x8xbf16>, vector<1x8x8xf32> -> vector<1x8x8xf32>
    "tpu.trace_stop"() : () -> ()
    %52 = vector.shape_cast %51 : vector<1x8x8xf32> to vector<8x8xf32>
    %53 = arith.truncf %52 : vector<8x8xf32> to vector<8x8xbf16>
    %c0_16 = arith.constant 0 : index
    %c0_17 = arith.constant 0 : index
    %54 = vector.load %arg14[%c0_16, %c0_17] : memref<8x32xbf16, #tpu.memory_space<vmem>>, vector<8x8xbf16>
    tpu.vector_store %arg14[%c0_16, %c0_17], %53 {strides = array<i32>} : memref<8x32xbf16, #tpu.memory_space<vmem>>, vector<8x8xbf16>,
    %55 = vector.extract_strided_slice %32 {offsets = [0, 8], sizes = [8, 8], strides = [1, 1]} : vector<8x96xbf16> to vector<8x8xbf16>
    %56 = vector.shape_cast %55 : vector<8x8xbf16> to vector<1x8x8xbf16>
    %57 = vector.extract_strided_slice %32 {offsets = [0, 40], sizes = [8, 8], strides = [1, 1]} : vector<8x96xbf16> to vector<8x8xbf16>
    %58 = vector.shape_cast %57 : vector<8x8xbf16> to vector<1x8x8xbf16>
    %59 = vector.extract_strided_slice %32 {offsets = [0, 72], sizes = [8, 8], strides = [1, 1]} : vector<8x96xbf16> to vector<8x8xbf16>
    %60 = vector.shape_cast %59 : vector<8x8xbf16> to vector<1x8x8xbf16>
    "tpu.trace_start"() <{level = 10 : i32, message = "bqe,bke->bqk"}> : () -> ()
    %cst_18 = arith.constant dense<0.000000e+00> : vector<1x8x8xf32>
    %61 = tpu.matmul %56, %58, %cst_18 {dimension_numbers = #tpu.dot_dimension_numbers<[2], [2], [1], [1], [0, 0, 0, 1, 1, 1], [0], [0]>} : vector<1x8x8xbf16>, vector<1x8x8xbf16>, vector<1x8x8xf32> -> vector<1x8x8xf32>
    "tpu.trace_stop"() : () -> ()
    %cst_19 = arith.constant dense<0xFF800000> : vector<1x8xf32>
    %62 = vector.multi_reduction <maximumf>, %61, %cst_19 [2] : vector<1x8x8xf32> to vector<1x8xf32>
    %63 = vector.shape_cast %62 : vector<1x8xf32> to vector<1x8x1xf32>
    %64 = vector.broadcast %63 : vector<1x8x1xf32> to vector<1x8x8xf32>
    %65 = arith.subf %61, %64 : vector<1x8x8xf32>
    %66 = math.exp %65 : vector<1x8x8xf32>
    %cst_20 = arith.constant dense<0.000000e+00> : vector<1x8xf32>
    %67 = vector.multi_reduction <add>, %66, %cst_20 [2] : vector<1x8x8xf32> to vector<1x8xf32>
    %68 = vector.shape_cast %67 : vector<1x8xf32> to vector<1x8x1xf32>
    %69 = tpu.reciprocal %68 {approx = true} : vector<1x8x1xf32> -> vector<1x8x1xf32>
    %70 = vector.broadcast %69 : vector<1x8x1xf32> to vector<1x8x8xf32>
    %71 = arith.mulf %66, %70 : vector<1x8x8xf32>
    %72 = arith.truncf %71 : vector<1x8x8xf32> to vector<1x8x8xbf16>
    "tpu.trace_start"() <{level = 10 : i32, message = "bqk,bke->bqe"}> : () -> ()
    %cst_21 = arith.constant dense<0.000000e+00> : vector<1x8x8xf32>
    %73 = tpu.matmul %72, %60, %cst_21 {dimension_numbers = #tpu.dot_dimension_numbers<[2], [1], [1], [2], [0, 0, 0, 1, 1, 2], [0], [0]>} : vector<1x8x8xbf16>, vector<1x8x8xbf16>, vector<1x8x8xf32> -> vector<1x8x8xf32>
    "tpu.trace_stop"() : () -> ()
    %74 = vector.shape_cast %73 : vector<1x8x8xf32> to vector<8x8xf32>
    %75 = arith.truncf %74 : vector<8x8xf32> to vector<8x8xbf16>
    %c0_22 = arith.constant 0 : index
    %c8 = arith.constant 8 : index
    %76 = vector.load %arg14[%c0_22, %c8] : memref<8x32xbf16, #tpu.memory_space<vmem>>, vector<8x8xbf16>
    tpu.vector_store %arg14[%c0_22, %c8], %75 {strides = array<i32>} : memref<8x32xbf16, #tpu.memory_space<vmem>>, vector<8x8xbf16>,
    %77 = vector.extract_strided_slice %32 {offsets = [0, 16], sizes = [8, 8], strides = [1, 1]} : vector<8x96xbf16> to vector<8x8xbf16>
    %78 = vector.shape_cast %77 : vector<8x8xbf16> to vector<1x8x8xbf16>
    %79 = vector.extract_strided_slice %32 {offsets = [0, 48], sizes = [8, 8], strides = [1, 1]} : vector<8x96xbf16> to vector<8x8xbf16>
    %80 = vector.shape_cast %79 : vector<8x8xbf16> to vector<1x8x8xbf16>
    %81 = vector.extract_strided_slice %32 {offsets = [0, 80], sizes = [8, 8], strides = [1, 1]} : vector<8x96xbf16> to vector<8x8xbf16>
    %82 = vector.shape_cast %81 : vector<8x8xbf16> to vector<1x8x8xbf16>
    "tpu.trace_start"() <{level = 10 : i32, message = "bqe,bke->bqk"}> : () -> ()
    %cst_23 = arith.constant dense<0.000000e+00> : vector<1x8x8xf32>
    %83 = tpu.matmul %78, %80, %cst_23 {dimension_numbers = #tpu.dot_dimension_numbers<[2], [2], [1], [1], [0, 0, 0, 1, 1, 1], [0], [0]>} : vector<1x8x8xbf16>, vector<1x8x8xbf16>, vector<1x8x8xf32> -> vector<1x8x8xf32>
    "tpu.trace_stop"() : () -> ()
    %cst_24 = arith.constant dense<0xFF800000> : vector<1x8xf32>
    %84 = vector.multi_reduction <maximumf>, %83, %cst_24 [2] : vector<1x8x8xf32> to vector<1x8xf32>
    %85 = vector.shape_cast %84 : vector<1x8xf32> to vector<1x8x1xf32>
    %86 = vector.broadcast %85 : vector<1x8x1xf32> to vector<1x8x8xf32>
    %87 = arith.subf %83, %86 : vector<1x8x8xf32>
    %88 = math.exp %87 : vector<1x8x8xf32>
    %cst_25 = arith.constant dense<0.000000e+00> : vector<1x8xf32>
    %89 = vector.multi_reduction <add>, %88, %cst_25 [2] : vector<1x8x8xf32> to vector<1x8xf32>
    %90 = vector.shape_cast %89 : vector<1x8xf32> to vector<1x8x1xf32>
    %91 = tpu.reciprocal %90 {approx = true} : vector<1x8x1xf32> -> vector<1x8x1xf32>
    %92 = vector.broadcast %91 : vector<1x8x1xf32> to vector<1x8x8xf32>
    %93 = arith.mulf %88, %92 : vector<1x8x8xf32>
    %94 = arith.truncf %93 : vector<1x8x8xf32> to vector<1x8x8xbf16>
    "tpu.trace_start"() <{level = 10 : i32, message = "bqk,bke->bqe"}> : () -> ()
    %cst_26 = arith.constant dense<0.000000e+00> : vector<1x8x8xf32>
    %95 = tpu.matmul %94, %82, %cst_26 {dimension_numbers = #tpu.dot_dimension_numbers<[2], [1], [1], [2], [0, 0, 0, 1, 1, 2], [0], [0]>} : vector<1x8x8xbf16>, vector<1x8x8xbf16>, vector<1x8x8xf32> -> vector<1x8x8xf32>
    "tpu.trace_stop"() : () -> ()
    %96 = vector.shape_cast %95 : vector<1x8x8xf32> to vector<8x8xf32>
    %97 = arith.truncf %96 : vector<8x8xf32> to vector<8x8xbf16>
    %c0_27 = arith.constant 0 : index
    %c16 = arith.constant 16 : index
    %98 = vector.load %arg14[%c0_27, %c16] : memref<8x32xbf16, #tpu.memory_space<vmem>>, vector<8x8xbf16>
    tpu.vector_store %arg14[%c0_27, %c16], %97 {strides = array<i32>} : memref<8x32xbf16, #tpu.memory_space<vmem>>, vector<8x8xbf16>,
    %99 = vector.extract_strided_slice %32 {offsets = [0, 24], sizes = [8, 8], strides = [1, 1]} : vector<8x96xbf16> to vector<8x8xbf16>
    %100 = vector.shape_cast %99 : vector<8x8xbf16> to vector<1x8x8xbf16>
    %101 = vector.extract_strided_slice %32 {offsets = [0, 56], sizes = [8, 8], strides = [1, 1]} : vector<8x96xbf16> to vector<8x8xbf16>
    %102 = vector.shape_cast %101 : vector<8x8xbf16> to vector<1x8x8xbf16>
    %103 = vector.extract_strided_slice %32 {offsets = [0, 88], sizes = [8, 8], strides = [1, 1]} : vector<8x96xbf16> to vector<8x8xbf16>
    %104 = vector.shape_cast %103 : vector<8x8xbf16> to vector<1x8x8xbf16>
    "tpu.trace_start"() <{level = 10 : i32, message = "bqe,bke->bqk"}> : () -> ()
    %cst_28 = arith.constant dense<0.000000e+00> : vector<1x8x8xf32>
    %105 = tpu.matmul %100, %102, %cst_28 {dimension_numbers = #tpu.dot_dimension_numbers<[2], [2], [1], [1], [0, 0, 0, 1, 1, 1], [0], [0]>} : vector<1x8x8xbf16>, vector<1x8x8xbf16>, vector<1x8x8xf32> -> vector<1x8x8xf32>
    "tpu.trace_stop"() : () -> ()
    %cst_29 = arith.constant dense<0xFF800000> : vector<1x8xf32>
    %106 = vector.multi_reduction <maximumf>, %105, %cst_29 [2] : vector<1x8x8xf32> to vector<1x8xf32>
    %107 = vector.shape_cast %106 : vector<1x8xf32> to vector<1x8x1xf32>
    %108 = vector.broadcast %107 : vector<1x8x1xf32> to vector<1x8x8xf32>
    %109 = arith.subf %105, %108 : vector<1x8x8xf32>
    %110 = math.exp %109 : vector<1x8x8xf32>
    %cst_30 = arith.constant dense<0.000000e+00> : vector<1x8xf32>
    %111 = vector.multi_reduction <add>, %110, %cst_30 [2] : vector<1x8x8xf32> to vector<1x8xf32>
    %112 = vector.shape_cast %111 : vector<1x8xf32> to vector<1x8x1xf32>
    %113 = tpu.reciprocal %112 {approx = true} : vector<1x8x1xf32> -> vector<1x8x1xf32>
    %114 = vector.broadcast %113 : vector<1x8x1xf32> to vector<1x8x8xf32>
    %115 = arith.mulf %110, %114 : vector<1x8x8xf32>
    %116 = arith.truncf %115 : vector<1x8x8xf32> to vector<1x8x8xbf16>
    "tpu.trace_start"() <{level = 10 : i32, message = "bqk,bke->bqe"}> : () -> ()
    %cst_31 = arith.constant dense<0.000000e+00> : vector<1x8x8xf32>
    %117 = tpu.matmul %116, %104, %cst_31 {dimension_numbers = #tpu.dot_dimension_numbers<[2], [1], [1], [2], [0, 0, 0, 1, 1, 2], [0], [0]>} : vector<1x8x8xbf16>, vector<1x8x8xbf16>, vector<1x8x8xf32> -> vector<1x8x8xf32>
    "tpu.trace_stop"() : () -> ()
    %118 = vector.shape_cast %117 : vector<1x8x8xf32> to vector<8x8xf32>
    %119 = arith.truncf %118 : vector<8x8xf32> to vector<8x8xbf16>
    %c0_32 = arith.constant 0 : index
    %c24 = arith.constant 24 : index
    %120 = vector.load %arg14[%c0_32, %c24] : memref<8x32xbf16, #tpu.memory_space<vmem>>, vector<8x8xbf16>
    tpu.vector_store %arg14[%c0_32, %c24], %119 {strides = array<i32>} : memref<8x32xbf16, #tpu.memory_space<vmem>>, vector<8x8xbf16>,
    %c0_33 = arith.constant 0 : index
    %c0_34 = arith.constant 0 : index
    %121 = vector.load %arg14[%c0_33, %c0_34] : memref<8x32xbf16, #tpu.memory_space<vmem>>, vector<8x32xbf16>
    %c0_35 = arith.constant 0 : index
    %c0_36 = arith.constant 0 : index
    %122 = vector.load %arg5[%c0_35, %c0_36] : memref<32x32xbf16, #tpu.memory_space<vmem>>, vector<32x32xbf16>
    %cst_37 = arith.constant dense<0.000000e+00> : vector<8x32xf32>
    %123 = tpu.matmul %121, %122, %cst_37 {dimension_numbers = #tpu.dot_dimension_numbers<[1], [0], [0], [1], [0, 0, 1, 1], [], []>} : vector<8x32xbf16>, vector<32x32xbf16>, vector<8x32xf32> -> vector<8x32xf32>
    %c0_38 = arith.constant 0 : index
    %c0_39 = arith.constant 0 : index
    %124 = vector.load %arg6[%c0_38, %c0_39] : memref<1x32xf32, #tpu.memory_space<vmem>>, vector<1x32xf32>
    %125 = vector.shape_cast %124 : vector<1x32xf32> to vector<32xf32>
    %126 = vector.shape_cast %125 : vector<32xf32> to vector<1x32xf32>
    %127 = vector.broadcast %126 : vector<1x32xf32> to vector<8x32xf32>
    %128 = arith.addf %123, %127 : vector<8x32xf32>
    %129 = arith.addf %0, %128 : vector<8x32xf32>
    %c0_40 = arith.constant 0 : index
    %c0_41 = arith.constant 0 : index
    %130 = vector.load %arg7[%c0_40, %c0_41] : memref<1x32xf32, #tpu.memory_space<vmem>>, vector<1x32xf32>
    %131 = vector.shape_cast %130 : vector<1x32xf32> to vector<32xf32>
    %c0_42 = arith.constant 0 : index
    %c0_43 = arith.constant 0 : index
    %132 = vector.load %arg8[%c0_42, %c0_43] : memref<1x32xf32, #tpu.memory_space<vmem>>, vector<1x32xf32>
    %133 = vector.shape_cast %132 : vector<1x32xf32> to vector<32xf32>
    %cst_44 = arith.constant dense<0.000000e+00> : vector<8xf32>
    %134 = vector.multi_reduction <add>, %129, %cst_44 [1] : vector<8x32xf32> to vector<8xf32>
    %135 = vector.shape_cast %134 : vector<8xf32> to vector<8x1xf32>
    %cst_45 = arith.constant 3.200000e+01 : f32
    %136 = vector.broadcast %cst_45 : f32 to vector<8x1xf32>
    %137 = arith.divf %135, %136 : vector<8x1xf32>
    %138 = vector.broadcast %137 : vector<8x1xf32> to vector<8x32xf32>
    %139 = arith.subf %129, %138 : vector<8x32xf32>
    %140 = arith.mulf %139, %139 : vector<8x32xf32>
    %cst_46 = arith.constant dense<0.000000e+00> : vector<8xf32>
    %141 = vector.multi_reduction <add>, %140, %cst_46 [1] : vector<8x32xf32> to vector<8xf32>
    %142 = vector.shape_cast %141 : vector<8xf32> to vector<8x1xf32>
    %cst_47 = arith.constant 3.200000e+01 : f32
    %143 = vector.broadcast %cst_47 : f32 to vector<8x1xf32>
    %144 = arith.divf %142, %143 : vector<8x1xf32>
    %145 = vector.broadcast %137 : vector<8x1xf32> to vector<8x32xf32>
    %146 = arith.subf %129, %145 : vector<8x32xf32>
    %cst_48 = arith.constant 9.99999974E-6 : f32
    %147 = vector.broadcast %cst_48 : f32 to vector<8x1xf32>
    %148 = arith.addf %144, %147 : vector<8x1xf32>
    %149 = math.rsqrt %148 : vector<8x1xf32>
    %150 = vector.broadcast %149 : vector<8x1xf32> to vector<8x32xf32>
    %151 = arith.mulf %146, %150 : vector<8x32xf32>
    %152 = vector.shape_cast %131 : vector<32xf32> to vector<1x32xf32>
    %153 = vector.broadcast %152 : vector<1x32xf32> to vector<8x32xf32>
    %154 = arith.mulf %151, %153 : vector<8x32xf32>
    %155 = vector.shape_cast %133 : vector<32xf32> to vector<1x32xf32>
    %156 = vector.broadcast %155 : vector<1x32xf32> to vector<8x32xf32>
    %157 = arith.addf %154, %156 : vector<8x32xf32>
    %158 = arith.truncf %157 : vector<8x32xf32> to vector<8x32xbf16>
    %c0_49 = arith.constant 0 : index
    %c0_50 = arith.constant 0 : index
    %159 = vector.load %arg9[%c0_49, %c0_50] : memref<32x128xbf16, #tpu.memory_space<vmem>>, vector<32x128xbf16>
    %cst_51 = arith.constant dense<0.000000e+00> : vector<8x128xf32>
    %160 = tpu.matmul %158, %159, %cst_51 {dimension_numbers = #tpu.dot_dimension_numbers<[1], [0], [0], [1], [0, 0, 1, 1], [], []>} : vector<8x32xbf16>, vector<32x128xbf16>, vector<8x128xf32> -> vector<8x128xf32>
    %c0_52 = arith.constant 0 : index
    %c0_53 = arith.constant 0 : index
    %161 = vector.load %arg10[%c0_52, %c0_53] : memref<1x128xf32, #tpu.memory_space<vmem>>, vector<1x128xf32>
    %162 = vector.shape_cast %161 : vector<1x128xf32> to vector<128xf32>
    %163 = vector.shape_cast %162 : vector<128xf32> to vector<1x128xf32>
    %164 = vector.broadcast %163 : vector<1x128xf32> to vector<8x128xf32>
    %165 = arith.addf %160, %164 : vector<8x128xf32>
    %cst_54 = arith.constant 0.000000e+00 : f32
    %cst_55 = arith.constant 6.000000e+00 : f32
    %166 = vector.broadcast %cst_54 : f32 to vector<8x128xf32>
    %167 = arith.maximumf %166, %165 : vector<8x128xf32>
    %168 = vector.broadcast %cst_55 : f32 to vector<8x128xf32>
    %169 = arith.minimumf %168, %167 : vector<8x128xf32>
    %170 = arith.truncf %169 : vector<8x128xf32> to vector<8x128xbf16>
    %c0_56 = arith.constant 0 : index
    %c0_57 = arith.constant 0 : index
    %171 = vector.load %arg11[%c0_56, %c0_57] : memref<128x32xbf16, #tpu.memory_space<vmem>>, vector<128x32xbf16>
    %cst_58 = arith.constant dense<0.000000e+00> : vector<8x32xf32>
    %172 = tpu.matmul %170, %171, %cst_58 {dimension_numbers = #tpu.dot_dimension_numbers<[1], [0], [0], [1], [0, 0, 1, 1], [], []>} : vector<8x128xbf16>, vector<128x32xbf16>, vector<8x32xf32> -> vector<8x32xf32>
    %c0_59 = arith.constant 0 : index
    %c0_60 = arith.constant 0 : index
    %173 = vector.load %arg12[%c0_59, %c0_60] : memref<1x32xf32, #tpu.memory_space<vmem>>, vector<1x32xf32>
    %174 = vector.shape_cast %173 : vector<1x32xf32> to vector<32xf32>
    %175 = vector.shape_cast %174 : vector<32xf32> to vector<1x32xf32>
    %176 = vector.broadcast %175 : vector<1x32xf32> to vector<8x32xf32>
    %177 = arith.addf %172, %176 : vector<8x32xf32>
    %178 = arith.addf %129, %177 : vector<8x32xf32>
    %c0_61 = arith.constant 0 : index
    %c0_62 = arith.constant 0 : index
    %179 = vector.load %arg13[%c0_61, %c0_62] : memref<8x32xf32, #tpu.memory_space<vmem>>, vector<8x32xf32>
    tpu.vector_store %arg13[%c0_61, %c0_62], %178 {strides = array<i32>} : memref<8x32xf32, #tpu.memory_space<vmem>>, vector<8x32xf32>,
    return
  }
  func.func @transform_0(%arg0: i32) -> (i32, i32) {
    %c0_i32 = arith.constant 0 : i32
    %c0_i32_0 = arith.constant 0 : i32
    return %arg0, %c0_i32 : i32, i32
  }
  func.func @transform_1(%arg0: i32) -> (i32, i32) {
    %c0_i32 = arith.constant 0 : i32
    %c0_i32_0 = arith.constant 0 : i32
    %c0_i32_1 = arith.constant 0 : i32
    return %c0_i32, %c0_i32_0 : i32, i32
  }
  func.func @transform_2(%arg0: i32) -> (i32, i32) {
    %c0_i32 = arith.constant 0 : i32
    %c0_i32_0 = arith.constant 0 : i32
    %c0_i32_1 = arith.constant 0 : i32
    return %c0_i32, %c0_i32_0 : i32, i32
  }
  func.func @transform_3(%arg0: i32) -> (i32, i32) {
    %c0_i32 = arith.constant 0 : i32
    %c0_i32_0 = arith.constant 0 : i32
    %c0_i32_1 = arith.constant 0 : i32
    return %c0_i32, %c0_i32_0 : i32, i32
  }
  func.func @transform_4(%arg0: i32) -> (i32, i32) {
    %c0_i32 = arith.constant 0 : i32
    %c0_i32_0 = arith.constant 0 : i32
    %c0_i32_1 = arith.constant 0 : i32
    return %c0_i32, %c0_i32_0 : i32, i32
  }
  func.func @transform_5(%arg0: i32) -> (i32, i32) {
    %c0_i32 = arith.constant 0 : i32
    %c0_i32_0 = arith.constant 0 : i32
    %c0_i32_1 = arith.constant 0 : i32
    return %c0_i32, %c0_i32_0 : i32, i32
  }
  func.func @transform_6(%arg0: i32) -> (i32, i32) {
    %c0_i32 = arith.constant 0 : i32
    %c0_i32_0 = arith.constant 0 : i32
    %c0_i32_1 = arith.constant 0 : i32
    return %c0_i32, %c0_i32_0 : i32, i32
  }
  func.func @transform_7(%arg0: i32) -> (i32, i32) {
    %c0_i32 = arith.constant 0 : i32
    %c0_i32_0 = arith.constant 0 : i32
    %c0_i32_1 = arith.constant 0 : i32
    return %c0_i32, %c0_i32_0 : i32, i32
  }
  func.func @transform_8(%arg0: i32) -> (i32, i32) {
    %c0_i32 = arith.constant 0 : i32
    %c0_i32_0 = arith.constant 0 : i32
    %c0_i32_1 = arith.constant 0 : i32
    return %c0_i32, %c0_i32_0 : i32, i32
  }
  func.func @transform_9(%arg0: i32) -> (i32, i32) {
    %c0_i32 = arith.constant 0 : i32
    %c0_i32_0 = arith.constant 0 : i32
    %c0_i32_1 = arith.constant 0 : i32
    return %c0_i32, %c0_i32_0 : i32, i32
  }
  func.func @transform_10(%arg0: i32) -> (i32, i32) {
    %c0_i32 = arith.constant 0 : i32
    %c0_i32_0 = arith.constant 0 : i32
    %c0_i32_1 = arith.constant 0 : i32
    return %c0_i32, %c0_i32_0 : i32, i32
  }
  func.func @transform_11(%arg0: i32) -> (i32, i32) {
    %c0_i32 = arith.constant 0 : i32
    %c0_i32_0 = arith.constant 0 : i32
    %c0_i32_1 = arith.constant 0 : i32
    return %c0_i32, %c0_i32_0 : i32, i32
  }
  func.func @transform_12(%arg0: i32) -> (i32, i32) {
    %c0_i32 = arith.constant 0 : i32
    %c0_i32_0 = arith.constant 0 : i32
    return %arg0, %c0_i32 : i32, i32
  }
}

</mosaic_0001>

<bundles_post_ra>
// kernel: tpu_custom_call.1
= control target key start
LH: loop header
LB: loop body
LE: loop exit
PB: predicated region body
PF: predicated region fallthrough
CT: control target
= control target key end

     0   :  { %s1531_s0 = inlined_call_operand.vmem [shape: f32[16,32], index: 0, kind: input, shape index: {}]   ;;  %s1532_s1 = inlined_call_operand.vmem [shape: f32[1,32], index: 1, kind: input, shape index: {}]   ;;  %s1533_s2 = inlined_call_operand.vmem [shape: f32[1,32], index: 2, kind: input, shape index: {}]   ;;  %s1534_s3 = inlined_call_operand.vmem [shape: bf16[32,96], index: 3, kind: input, shape index: {}]   ;;  %s1535_s4 = inlined_call_operand.vmem [shape: bf16[32,32], index: 4, kind: input, shape index: {}]   ;;  %s1536_s5 = inlined_call_operand.vmem [shape: f32[1,32], index: 5, kind: input, shape index: {}]   ;;  %s1537_s6 = inlined_call_operand.vmem [shape: f32[1,32], index: 6, kind: input, shape index: {}]   ;;  %s1538_s7 = inlined_call_operand.vmem [shape: f32[1,32], index: 7, kind: input, shape index: {}]   ;;  %s1539_s8 = inlined_call_operand.vmem [shape: bf16[32,128], index: 8, kind: input, shape index: {}]   ;;  %s1540_s9 = inlined_call_operand.vmem [shape: f32[1,128], index: 9, kind: input, shape index: {}]   ;;  %s1541_s10 = inlined_call_operand.vmem [shape: bf16[128,32], index: 10, kind: input, shape index: {}]   ;;  %s1542_s11 = inlined_call_operand.vmem [shape: f32[1,32], index: 11, kind: input, shape index: {}]   ;;  %s1543_s12 = inlined_call_operand.hbm [shape: f32[16,32], index: 12, kind: output, shape index: {}]  }
   0x1   :  { %1544 = sst [smem:[#allocation6_spill]] %s1531_s0 }
   0x2   :  { %1545 = sst [smem:[#allocation7_spill]] %s1532_s1 }
   0x3   :  { %1546 = sst [smem:[#allocation8_spill]] %s1533_s2 }
   0x4   :  { %17 = vsyncpa [#allocation4], 0 }
   0x5   :  { %19 = vsyncpa [#allocation4 + $0x1], 0  ;;  %s1322_s21 = smov 0   ;;  %s1324_s22 = smov 0  }
   0x6   :  { %s1326_s23 = smov 0   ;;  %s1328_s24 = smov 0  }
   0x7 LB: > { %s1343_s25 = sadd.s32 4294967295, %s1240_s24   ;;  %s1004_s26 = sadd.s32 4294967294, %s1240_s24   ;;  %s1240_s24 = sphi %s1328_s24, %s1555_s24   ;;  %s1236_s23 = sphi %s1326_s23, %s1554_s23   ;;  %s1232_s22 = sphi %s1324_s22, %s1553_s22   ;;  %s1228_s21 = sphi %s1322_s21, %s1552_s21  }
   0x8   : > { %s1347_s27 = sadd.s32 1, %s1240_s24   ;;  %s289_s28 = sadd.s32 1, %s1236_s23 }
   0x9   : > { %s286_s29 = ssub.s32 %s1240_s24, %s1347_s27  ;;  %p299_p0 = scmp.ne.s32.totalorder %s1236_s23, %s1232_s22 }
   0xa   : > { %p287_p1 = scmp.eq.s32.totalorder %s286_s29, 0  ;;  %p300_p2 = scmp.eq.s32.totalorder %s1343_s25, 1 }
   0xb   : > { %p305_p3 = scmp.ne.s32.totalorder %s1232_s22, %s1228_s21  ;;  %p306_p4 = scmp.eq.s32.totalorder %s1004_s26, 1 }
   0xc   : > { %s1358_s30 = scalar_select %p287_p1, %s1236_s23, %s289_s28  }
   0xd   : > { %p1360_p5 = por %p300_p2, %p299_p0  ;;  %p1364_p6 = por %p306_p4, %p305_p3 }
   0xe   : > { %p1007_p7 = scmp.ge.s32.totalorder %s1240_s24, 1  ;;  %p364_p8 = scmp.lt.s32.totalorder %s1240_s24, 3 }
  0x10   : > { %p365_p9 = pnand %p1007_p7, %p364_p8 }
  0x11   : > { %p405_p10 = scmp.lt.s32.totalorder (!%p365_p9), %s1343_s25, 1  ;;  %s1549_s0 = sld [smem:[#allocation6_spill]] (!%p365_p9) }
  0x12   : > { %368 = sbr.rel (%p365_p9) target bundleno = 2314 (0x90a), region = 68  ;;  %s1550_s1 = sld [smem:[#allocation7_spill]] (!%p365_p9) }
  0x13   : > { %s1551_s2 = sld [smem:[#allocation8_spill]] (!%p365_p9)  ;;  %s1244_s20 = smov (!%p365_p9), 64  }
  0x14   : > { %s1245_s26 = smov (!%p365_p9), 96   ;;  %s1246_s28 = smov (!%p365_p9), 72  }
  0x15   : > { %s1247_s29 = smov (!%p365_p9), 80   ;;  %s1250_s17 = smov (!%p365_p9), 112  }
  0x16   : > { %s1251_s18 = smov (!%p365_p9), 40  }
  0x17   : > { %s406_s15 = scalar_select %p405_p10, %s1343_s25, 1  ;;  %vm413_vm0 = vcmask 261120   ;;  %v1242_v2 = vmov 32.0   ;;  %v1082_v14 = vld [vmem:[%s1534_s3 + $0x8] sm:$0xff]  ;;  %v1081_v15 = vld [vmem:[%s1534_s3] sm:$0xff]  ;;  %vm527_vm5 = vcmask 1043456  }
  0x18   : > { %1156 = vrcp.f32 %v1242_v2  ;;  %477 = vmatpush.bf16.msra.mxu0 %v1082_v14  ;;  %v1149_v25 = vld [vmem:[%s1550_s1] ss:$0 sm:$0xff]  ;;  %vm490_vm6 = vcmask 64512   ;;  %vm545_vm7 = vcmask 60416   ;;  %vm608_vm8 = vcmask 126016  }
  0x19   : > { %s1009_s16 = sshll.u32 %s406_s15, 3  ;;  %v1150_v28 = vld [vmem:[%s1551_s2] ss:$0 sm:$0xff]  ;;  %s1248_s15 = smov 120   ;;  %vm671_vm9 = vcmask 191616   ;;  %vm734_vm10 = vcmask 257216  }
  0x1a   : > { %s408_s19 = scalar_lea.vmem %s1549_s0, %s1009_s16  ;;  %s1249_s16 = smov 104  }
  0x1b   : > { %v1375_v0 = vld [vmem:[%s408_s19] sm:$0xff]  ;;  %s1243_s19 = smov 88  }
  0x1c   : > { %v414_v1 = vsel %vm413_vm0, %v1375_v0, 0.0  ;;  %478 = vmatpush.bf16.msra.mxu0 %v1081_v15 }
  0x1d   : > { %415 = vadd.xlane.f32.xlu0 %v414_v1 }
  0x1e   : > { %v1157_v3 = vpop.eup %1156 }
  0x1f   : > { %v418_v4 = vmul.f32 32.0, %v1157_v3  ;;  %vm422_vm1 = vweird.f32 %v1157_v3 }
  0x21   : > { %v419_v5 = vsub.f32 1.0, %v418_v4 }
  0x23   : > { %v420_v6 = vmul.f32 %v1157_v3, %v419_v5 }
  0x25   : > { %v421_v7 = vadd.f32 %v1157_v3, %v420_v6 }
  0x27   : > { %v1379_v8 = vsel %vm422_vm1, %v1157_v3, %v421_v7 }
  0x90   : > { %v416_v9 = vpop.xlane.xlu0 %415 }
  0x91   : > { %v424_v10 = vmul.f32 %v1379_v8, %v416_v9 }
  0x93   : > { %v425_v11 = vsub.f32 %v1375_v0, %v424_v10 }
  0x95   : > { %v426_v12 = vmul.f32 %v425_v11, %v425_v11 }
  0x97   : > { %v427_v13 = vsel %vm413_vm0, %v426_v12, 0.0 }
  0x98   : > { %428 = vadd.xlane.f32.xlu0 %v427_v13 }
 0x10b   : > { %v429_v16 = vpop.xlane.xlu0 %428 }
 0x10c   : > { %v430_v17 = vmul.f32 %v429_v16, %v1379_v8 }
 0x10e   : > { %v431_v18 = vadd.f32 1e-05, %v430_v17 }
 0x110   : > { %1158 = vrsqrt.f32 %v431_v18  ;;  %vm438_vm3 = vweird.f32 %v431_v18 }
 0x116   : > { %v1159_v19 = vpop.eup %1158 }
 0x117   : > { %v433_v20 = vmul.f32 %v1159_v19, %v431_v18  ;;  %vm439_vm2 = vweird.f32 %v1159_v19 }
 0x118   : > { %vm440_vm4 = vmor %vm438_vm3, %vm439_vm2 }
 0x119   : > { %v434_v21 = vmul.f32 %v1159_v19, %v433_v20 }
 0x11b   : > { %v435_v22 = vmul.f32 0.5, %v434_v21 }
 0x11d   : > { %v436_v23 = vsub.f32 1.5, %v435_v22 }
 0x11f   : > { %v437_v24 = vmul.f32 %v1159_v19, %v436_v23 }
 0x121   : > { %v441_v26 = vsel %vm440_vm4, %v1159_v19, %v437_v24 }
 0x122   : > { %v442_v27 = vmul.f32 %v441_v26, %v425_v11 }
 0x124   : > { %v446_v29 = vmul.f32 %v1149_v25, %v442_v27 }
 0x126   : > { %v450_v30 = vadd.f32 %v1150_v28, %v446_v29 }
 0x128   : > { %v451_v31 = vpack.c.bf16 %v450_v30, %v450_v30 }
 0x12a   : > { %1018 = vmatmul.msk.bf16.vlgmr.msra.gmra.mxu0 %vm413_vm0, %v451_v31 }
 0x1a7   : > { %v480_v32 = vpop.f32.mrf.mxu0 }
 0x1a8   : > { %v484_v33 = vpack.c.bf16 %v480_v32, %v480_v32 }
 0x1aa   : > { %v486_v34 = vunpack.c.l.b16 %v484_v33 }
 0x1ac   : > { %v1398_v35 = vpack.c.b16 %v486_v34, %v486_v34 }
 0x1ae   : > { %549 = vrot.lane.b32.xlu0 %v1398_v35, %s1243_s19  ;;  %522 = vrot.lane.b32.xlu2 %v1398_v35, %s1244_s20  ;;  %s1252_s19 = smov 48   ;;  %s1253_s20 = smov 56  }
 0x1af   : > { %488 = vrot.lane.b32.xlu1 %v1398_v35, %s1245_s26  ;;  %v482_v36 = vpop.f32.mrf.mxu0  ;;  %s1254_s26 = smov 16  }
 0x1b6   : > { %675 = vrot.lane.b32.xlu0 %v1398_v35, %s1246_s28  ;;  %s1255_s28 = smov 8  }
 0x1be   : > { %612 = vrot.lane.b32.xlu0 %v1398_v35, %s1247_s29  ;;  %s1256_s29 = smov 24  }
 0x208   : > { %v523_v37 = vpop.permute.xlu2 %522 }
 0x209   : > { %v529_v38 = vsel %vm527_vm5, %v523_v37, 0 }
 0x20a   : > { %538 = vmatpush.bf16.msra.mxu2 %v529_v38 }
 0x220   : > { %v550_v39 = vpop.permute.xlu0 %549 }
 0x221   : > { %v489_v40 = vpop.permute.xlu1 %488  ;;  %v555_v41 = vsel %vm490_vm6, %v550_v39, 0 }
 0x222   : > { %v495_v42 = vsel %vm490_vm6, %v489_v40, 0  ;;  %564 = vmatpush.bf16.xpose.msrb.mxu2 %v555_v41 }
 0x223   : > { %504 = vmatpush.bf16.xpose.msra.mxu1 %v495_v42 }
 0x228   : > { %v676_v43 = vpop.permute.xlu0 %675 }
 0x229   : > { %v681_v44 = vsel %vm490_vm6, %v676_v43, 0 }
 0x22a   : > { %1019 = vmatmul.msk.bf16.vlgmr.msra.gmra.mxu1 %vm490_vm6, %v484_v33  ;;  %690 = vmatpush.bf16.xpose.msra.mxu3 %v681_v44 }
 0x230   : > { %v613_v45 = vpop.permute.xlu0 %612 }
 0x231   : > { %v618_v46 = vsel %vm490_vm6, %v613_v45, 0 }
 0x232   : > { %627 = vmatpush.bf16.xpose.msrb.mxu0 %v618_v46 }
 0x2a7   : > { %v506_v47 = vpop.f32.mrf.mxu1 }
 0x2a8   : > { %v510_v48 = vsel %vm490_vm6, %v506_v47, -inf }
 0x2a9   : > { %511 = vmax.xlane.f32.xlu1 %v510_v48 }
 0x2af   : > { %v508_v49 = vpop.f32.mrf.mxu1 }
 0x31c   : > { %v512_v50 = vpop.xlane.xlu1 %511 }
 0x31d   : > { %v513_v51 = vsub.f32 %v506_v47, %v512_v50 }
 0x31f   : > { %v514_v52 = vmul.f32 1.442695, %v513_v51 }
 0x321   : > { %1160 = vpow2.f32 %v514_v52 }
 0x327   : > { %v1161_v53 = vpop.eup %1160 }
 0x328   : > { %v516_v54 = vsel %vm490_vm6, %v1161_v53, 0.0 }
 0x329   : > { %517 = vadd.xlane.f32.xlu2 %v516_v54  ;;  %v1084_v54 = vld [vmem:[%s1535_s4 + $0x8] sm:$0xff] }
 0x32a   : > { %766 = vmatpush.bf16.msra.mxu0 %v1084_v54 }
 0x341   : > { %547 = vrot.lane.b32.xlu2 %v1398_v35, %s1248_s15 }
 0x349   : > { %673 = vrot.lane.b32.xlu2 %v1398_v35, %s1249_s16 }
 0x351   : > { %610 = vrot.lane.b32.xlu2 %v1398_v35, %s1250_s17 }
 0x39c   : > { %v518_v55 = vpop.xlane.xlu2 %517 }
 0x39d   : > { %1162 = vrcp.f32 %v518_v55 }
 0x3a3   : > { %v1163_v56 = vpop.eup %1162 }
 0x3a4   : > { %v548_v57 = vpop.permute.xlu2 %547  ;;  %v520_v58 = vmul.f32 %v1163_v56, %v1161_v53 }
 0x3a6   : > { %v521_v59 = vpack.c.bf16 %v520_v58, %v520_v58 }
 0x3a8   : > { %1020 = vmatmul.msk.bf16.vlgmr.msra.gmra.mxu2 %vm490_vm6, %v521_v59 }
 0x3ac   : > { %v674_v60 = vpop.permute.xlu2 %673 }
 0x3ad   : > { %1025 = vmatmul.msk.bf16.vlgmr.msra.gmra.mxu3 %vm490_vm6, %v674_v60  ;;  %v1151_v60 = vld [vmem:[%s1536_s5] ss:$0 sm:$0xff] }
 0x3b4   : > { %v611_v61 = vpop.permute.xlu2 %610 }
 0x3b5   : > { %1023 = vmatmul.msk.bf16.vlgmr.msrb.gmra.mxu0 %vm490_vm6, %v611_v61 }
 0x3b8   : > { %1021 = vmatmul.msk.bf16.vlgmr.msrb.gmra.mxu2 %vm490_vm6, %v548_v57  ;;  %v1083_v57 = vld [vmem:[%s1535_s4] sm:$0xff] }
 0x3b9   : > { %767 = vmatpush.bf16.msra.mxu0 %v1083_v57 }
 0x42b   : > { %v540_v62 = vpop.f32.mrf.mxu2 }
 0x42c   : > { %v544_v63 = vpack.c.bf16 %v540_v62, %v540_v62 }
 0x42e   : > { %546 = vst.msk [vmem:[#allocation2] sm:$0xf] %vm545_vm7, %v544_v63 }
 0x430   : > { %v692_v1 = vpop.f32.mrf.mxu3 }
 0x431   : > { %v696_v2 = vsel %vm490_vm6, %v692_v1, -inf }
 0x432   : > { %697 = vmax.xlane.f32.xlu0 %v696_v2  ;;  %v629_v3 = vpop.f32.mrf.mxu0 }
 0x433   : > { %v542_v4 = vpop.f32.mrf.mxu2  ;;  %v633_v5 = vsel %vm490_vm6, %v629_v3, -inf }
 0x434   : > { %634 = vmax.xlane.f32.xlu2 %v633_v5 }
 0x438   : > { %v694_v6 = vpop.f32.mrf.mxu3 }
 0x43a   : > { %v631_v7 = vpop.f32.mrf.mxu0 }
 0x43b   : > { %v566_v9 = vpop.f32.mrf.mxu2 }
 0x43c   : > { %v570_v10 = vsel %vm490_vm6, %v566_v9, -inf }
 0x43d   : > { %571 = vmax.xlane.f32.xlu1 %v570_v10  ;;  %v1094_v10 = vld [vmem:[%s1541_s10 + $0x38] sm:$0xff] }
 0x43e   : > { %914 = vmatpush.bf16.msrb.mxu3 %v1094_v10 }
 0x443   : > { %v568_v11 = vpop.f32.mrf.mxu2 }
 0x44c   : > { %708 = vrot.lane.b32.xlu2 %v1398_v35, %s1251_s18 }
 0x4a5   : > { %v698_v22 = vpop.xlane.xlu0 %697 }
 0x4a6   : > { %v699_v23 = vsub.f32 %v692_v1, %v698_v22 }
 0x4a7   : > { %v635_v12 = vpop.xlane.xlu2 %634 }
 0x4a8   : > { %v636_v13 = vsub.f32 %v629_v3, %v635_v12  ;;  %v700_v24 = vmul.f32 1.442695, %v699_v23 }
 0x4aa   : > { %v637_v14 = vmul.f32 1.442695, %v636_v13  ;;  %v1093_v13 = vld [vmem:[%s1541_s10 + $0x30] sm:$0xff] }
 0x4ab   : > { %915 = vmatpush.bf16.msrb.mxu3 %v1093_v13 }
 0x4ac   : > { %1164 = vpow2.f32 %v637_v14 }
 0x4b0   : > { %v572_v15 = vpop.xlane.xlu1 %571 }
 0x4b1   : > { %v573_v16 = vsub.f32 %v566_v9, %v572_v15  ;;  %v1086_v9 = vld [vmem:[%s1539_s8 + $0x8] sm:$0xff] }
 0x4b2   : > { %v1165_v17 = vpop.eup %1164  ;;  %v1092_v15 = vld [vmem:[%s1541_s10 + $0x28] sm:$0xff] }
 0x4b3   : > { %v574_v18 = vmul.f32 1.442695, %v573_v16  ;;  %v639_v19 = vsel %vm490_vm6, %v1165_v17, 0.0  ;;  %916 = vmatpush.bf16.msrb.mxu3 %v1092_v15  ;;  %v1091_v16 = vld [vmem:[%s1541_s10 + $0x20] sm:$0xff] }
 0x4b4   : > { %640 = vadd.xlane.f32.xlu0 %v639_v19 }
 0x4b5   : > { %1166 = vpow2.f32 %v574_v18 }
 0x4b6   : > { %1168 = vpow2.f32 %v700_v24  ;;  %v1152_v24 = vld [vmem:[%s1537_s6] ss:$0 sm:$0xff] }
 0x4b7   : > { %917 = vmatpush.bf16.msrb.mxu3 %v1091_v16 }
 0x4bb   : > { %v1167_v20 = vpop.eup %1166 }
 0x4bc   : > { %v576_v21 = vsel %vm490_vm6, %v1167_v20, 0.0  ;;  %v1169_v25 = vpop.eup %1168 }
 0x4bd   : > { %577 = vadd.xlane.f32.xlu1 %v576_v21  ;;  %v702_v26 = vsel %vm490_vm6, %v1169_v25, 0.0  ;;  %v1089_v21 = vld [vmem:[%s1541_s10 + $0x10] sm:$0xff] }
 0x4c8   : > { %645 = vrot.lane.b32.xlu0 %v1398_v35, %s1252_s19 }
 0x4d6   : > { %582 = vrot.lane.b32.xlu1 %v1398_v35, %s1253_s20  ;;  %v709_v35 = vpop.permute.xlu2 %708  ;;  %s402_s20 = sand.u32 1, %s1232_s22  }
 0x4d7   : > { %v714_v39 = vsel %vm527_vm5, %v709_v35, 0 }
 0x500   : > { %703 = vadd.xlane.f32.xlu1 %v702_v26 }
 0x527   : > { %v641_v27 = vpop.xlane.xlu0 %640 }
 0x528   : > { %1170 = vrcp.f32 %v641_v27  ;;  %v1153_v27 = vld [vmem:[%s1538_s7] ss:$0 sm:$0xff] }
 0x52e   : > { %v1171_v28 = vpop.eup %1170 }
 0x52f   : > { %v643_v29 = vmul.f32 %v1171_v28, %v1165_v17 }
 0x530   : > { %v578_v31 = vpop.xlane.xlu1 %577 }
 0x531   : > { %v644_v33 = vpack.c.bf16 %v643_v29, %v643_v29  ;;  %1172 = vrcp.f32 %v578_v31  ;;  %v1088_v31 = vld [vmem:[%s1541_s10 + $0x8] sm:$0xff] }
 0x537   : > { %v1173_v34 = vpop.eup %1172 }
 0x538   : > { %v580_v36 = vmul.f32 %v1173_v34, %v1167_v20 }
 0x53a   : > { %v646_v30 = vpop.permute.xlu0 %645  ;;  %v581_v40 = vpack.c.bf16 %v580_v36, %v580_v36 }
 0x53b   : > { %v651_v32 = vsel %vm527_vm5, %v646_v30, 0 }
 0x53c   : > { %660 = vmatpush.bf16.msrb.mxu1 %v651_v32  ;;  %v1087_v32 = vld [vmem:[%s1541_s10] sm:$0xff] }
 0x53f   : > { %1024 = vmatmul.msk.bf16.vlgmr.msrb.gmra.mxu1 %vm490_vm6, %v644_v33  ;;  %v1154_v33 = vld [vmem:[%s1540_s9] ss:$0 sm:$0xff] }
 0x540   : > { %836 = vmatpush.bf16.msra.mxu1 %v1086_v9 }
 0x548   : > { %v583_v37 = vpop.permute.xlu1 %582 }
 0x549   : > { %v588_v38 = vsel %vm527_vm5, %v583_v37, 0 }
 0x54a   : > { %597 = vmatpush.bf16.msra.mxu2 %v588_v38 }
 0x54d   : > { %1022 = vmatmul.msk.bf16.vlgmr.msra.gmra.mxu2 %vm490_vm6, %v581_v40  ;;  %v1155_v40 = vld [vmem:[%s1542_s11] ss:$0 sm:$0xff] }
 0x54e   : > { %723 = vmatpush.bf16.msrb.mxu2 %v714_v39 }
 0x573   : > { %v704_v41 = vpop.xlane.xlu1 %703 }
 0x574   : > { %1174 = vrcp.f32 %v704_v41 }
 0x57a   : > { %v1175_v42 = vpop.eup %1174 }
 0x57b   : > { %v706_v43 = vmul.f32 %v1175_v42, %v1169_v25 }
 0x57d   : > { %v707_v44 = vpack.c.bf16 %v706_v43, %v706_v43 }
 0x57f   : > { %1026 = vmatmul.msk.bf16.vlgmr.msrb.gmra.mxu2 %vm490_vm6, %v707_v44 }
 0x5bc   : > { %v662_v45 = vpop.f32.mrf.mxu1 }
 0x5bd   : > { %v666_v46 = vpack.c.bf16 %v662_v45, %v662_v45 }
 0x5bf   : > { %668 = vrot.lane.b32.xlu0 %v666_v46, %s1254_s26  ;;  %s1008_s26 = sshll.u32 %s402_s20, 3 }
 0x5c0   : > { %s404_s19 = scalar_lea.vmem [#allocation3], %s1008_s26  ;;  %s1198_s26 = scalar_lea.hbm %s1543_s12, 16 }
 0x5c1   : > { %s942_s0 = sshll.u32 %s404_s19, 4  ;;  %s943_s0 = int_to_ptr.vmem [resolvable:$true] %s942_s0 }
 0x5c4   : > { %v664_v47 = vpop.f32.mrf.mxu1 }
 0x5d0   : > { %v599_v48 = vpop.f32.mrf.mxu2 }
 0x5d1   : > { %v603_v49 = vpack.c.bf16 %v599_v48, %v599_v48 }
 0x5d3   : > { %605 = vrot.lane.b32.xlu2 %v603_v49, %s1255_s28  ;;  %s1078_s28 = sshll.u32 %s1343_s25, 3  ;;  %s930_s25 = scalar_lea.sflag [#allocation4], %s402_s20 }
 0x5d4   : > { %s940_s18 = scalar_lea.hbm %s1543_s12, %s1078_s28 }
 0x5d5   : > { %s944_s1 = sshll.u32 %s940_s18, 4  ;;  %s945_s1 = int_to_ptr.hbm [resolvable:$true] %s944_s1 }
 0x5d6   : > { %s1192_s2 = sshra.s32 %s945_s1, 4  ;;  %s1193_s2 = int_to_ptr.hbm [resolvable:$true] %s1192_s2 }
 0x5d7   : > { %p1199_p0 = scmp.lt.s32.totalorder %s1193_s2, %s1543_s12 }
 0x5d8   : > { %v601_v50 = vpop.f32.mrf.mxu2 }
 0x602   : > { %v725_v51 = vpop.f32.mrf.mxu2 }
 0x603   : > { %v729_v52 = vpack.c.bf16 %v725_v51, %v725_v51 }
 0x605   : > { %731 = vrot.lane.b32.xlu2 %v729_v52, %s1256_s29  ;;  %s1194_s29 = scalar_lea.hbm %s1193_s2, 8 }
 0x606   : > { %p1195_p11 = scmp.ne.s32.totalorder %s1193_s2, %s1194_s29  ;;  %p1200_p1 = scmp.lt.s32.totalorder %s1198_s26, %s1194_s29 }
 0x608   : > { %p1196_p12 = pnand %p1195_p11, %p1360_p5  ;;  %p1201_p2 = por %p1200_p1, %p1199_p0 }
 0x60a   : > { %v727_v53 = vpop.f32.mrf.mxu2  ;;  %p1197_p13 = pneg %p1196_p12 }
 0x60c   : > { %p1202_p3 = pnand %p1201_p2, %p1197_p13 }
 0x62d   : > { %v606_v55 = vpop.permute.xlu2 %605 }
 0x62e   : > { %609 = vst.msk [vmem:[#allocation2] sm:$0xf] %vm608_vm8, %v606_v55 }
 0x631   : > { %v669_v56 = vpop.permute.xlu0 %668 }
 0x632   : > { %672 = vst.msk [vmem:[#allocation2] sm:$0xf] %vm671_vm9, %v669_v56 }
 0x65f   : > { %v732_v58 = vpop.permute.xlu2 %731 }
 0x660   : > { %735 = vst.msk [vmem:[#allocation2] sm:$0xf] %vm734_vm10, %v732_v58 }
 0x667   : > { %v736_v59 = vld [vmem:[#allocation2] sm:$0xf] }
 0x668   : > { %1035 = vmatmul.msk.bf16.vlgmr.msra.gmra.mxu0 %vm413_vm0, %v736_v59 }
 0x6e5   : > { %v769_v61 = vpop.f32.mrf.mxu0 }
 0x6e6   : > { %v770_v62 = vadd.f32 %v1151_v60, %v769_v61 }
 0x6e8   : > { %v1446_v63 = vadd.f32 %v770_v62, %v1375_v0  ;;  %v1085_v0 = vld [vmem:[%s1539_s8] sm:$0xff] }
 0x6e9   : > { %837 = vmatpush.bf16.msra.mxu1 %v1085_v0 }
 0x6ea   : > { %v776_v1 = vsel %vm413_vm0, %v1446_v63, 0.0 }
 0x6eb   : > { %777 = vadd.xlane.f32.xlu0 %v776_v1 }
 0x6ed   : > { %v771_v2 = vpop.f32.mrf.mxu0 }
 0x75e   : > { %v778_v3 = vpop.xlane.xlu0 %777 }
 0x75f   : > { %v779_v4 = vmul.f32 %v778_v3, %v1379_v8 }
 0x761   : > { %v780_v5 = vsub.f32 %v1446_v63, %v779_v4 }
 0x763   : > { %v781_v6 = vmul.f32 %v780_v5, %v780_v5 }
 0x765   : > { %v782_v7 = vsel %vm413_vm0, %v781_v6, 0.0 }
 0x766   : > { %783 = vadd.xlane.f32.xlu1 %v782_v7 }
 0x7d9   : > { %v784_v11 = vpop.xlane.xlu1 %783 }
 0x7da   : > { %v785_v12 = vmul.f32 %v784_v11, %v1379_v8  ;;  %v1090_v8 = vld [vmem:[%s1541_s10 + $0x18] sm:$0xff] }
 0x7db   : > { %918 = vmatpush.bf16.msrb.mxu3 %v1090_v8 }
 0x7dc   : > { %v786_v14 = vadd.f32 1e-05, %v785_v12 }
 0x7de   : > { %1176 = vrsqrt.f32 %v786_v14  ;;  %vm793_vm12 = vweird.f32 %v786_v14 }
 0x7df   : > { %919 = vmatpush.bf16.msrb.mxu3 %v1089_v21 }
 0x7e3   : > { %920 = vmatpush.bf16.msrb.mxu3 %v1088_v31 }
 0x7e4   : > { %v1177_v17 = vpop.eup %1176 }
 0x7e5   : > { %v788_v18 = vmul.f32 %v1177_v17, %v786_v14  ;;  %vm794_vm11 = vweird.f32 %v1177_v17 }
 0x7e6   : > { %vm795_vm13 = vmor %vm793_vm12, %vm794_vm11 }
 0x7e7   : > { %v789_v19 = vmul.f32 %v1177_v17, %v788_v18  ;;  %921 = vmatpush.bf16.msrb.mxu3 %v1087_v32 }
 0x7e9   : > { %v790_v20 = vmul.f32 0.5, %v789_v19 }
 0x7eb   : > { %v791_v22 = vsub.f32 1.5, %v790_v20 }
 0x7ed   : > { %v792_v23 = vmul.f32 %v1177_v17, %v791_v22 }
 0x7ef   : > { %v796_v25 = vsel %vm795_vm13, %v1177_v17, %v792_v23 }
 0x7f0   : > { %v797_v26 = vmul.f32 %v796_v25, %v780_v5 }
 0x7f2   : > { %v801_v28 = vmul.f32 %v1152_v24, %v797_v26 }
 0x7f4   : > { %v805_v29 = vadd.f32 %v1153_v27, %v801_v28 }
 0x7f6   : > { %v806_v30 = vpack.c.bf16 %v805_v29, %v805_v29 }
 0x7f8   : > { %1044 = vmatmul.msk.bf16.vlgmr.msra.gmra.mxu1 %vm413_vm0, %v806_v30 }
 0x875   : > { %v839_v34 = vpop.f32.mrf.mxu1 }
 0x876   : > { %v840_v35 = vadd.f32 %v1154_v33, %v839_v34 }
 0x878   : > { %v843_v36 = vmax.f32 %v840_v35, 0.0 }
 0x87a   : > { %v844_v37 = vmin.f32 %v843_v36, 6.0 }
 0x87c   : > { %v845_v38 = vpack.c.bf16 %v844_v37, %v844_v37 }
 0x87d   : > { %v841_v39 = vpop.f32.mrf.mxu1 }
 0x87e   : > { %922 = vmatmul.bf16.vlgmr.msrb.gmra.mxu3 %v845_v38 }
 0x901   : > { %v923_v41 = vpop.f32.mrf.mxu3 }
 0x902   : > { %v924_v42 = vadd.f32 %v1155_v40, %v923_v41 }
 0x904   : > { %v927_v43 = vadd.f32 %v924_v42, %v1446_v63 }
 0x906   : > { %928 = vst.msk [vmem:[%s404_s19] sm:$0xff] %vm413_vm0, %v927_v43 }
 0x907   : > { %1205 = shalt.err (!%p1202_p3)
}
 0x908   : > { %1095 = dma.vmem_to_hbm [thread:$0]  (%p1360_p5), %s943_s0, 128, %s945_s1, %s930_s25  }
 0x909   : > { %v925_v44 = vpop.f32.mrf.mxu3 }
 0x90a PF: > { %p1101_p4 = scmp.ge.s32.totalorder %s1240_s24, 2  ;;  %s956_s20 = sand.u32 1, %s1228_s21  }
 0x90b   : > { %s957_s18 = scalar_lea.sflag [#allocation4], %s956_s20 }
 0x90c   : > { %p1098_p7 = pnand %p1101_p4, %p1364_p6 }
 0x90e   : > { %p1099_p8 = pneg %p1098_p7 }
 0x910   : > { %1223 = dma.done.wait (%p1099_p8), %s957_s18, 128  }
 0x911   : > { %1225 = vsyncadd (%p1099_p8), %s957_s18, 4294967168  ;;  %p22_p9 = scmp.ge.s32.totalorder %s1347_s27, 4   ;;  %s1552_s21 = smov %s1232_s22 }
 0x912   : > { %s1553_s22 = smov %s1236_s23  ;;  %s1554_s23 = smov %s1358_s30 }
 0x913   : > { %s1555_s24 = smov %s1347_s27  ;;  %24 = sbr.rel (!%p22_p9) target bundleno = 7 (0x7), region = 103 }
 0x918   :  { %963 = vsyncpa [#allocation4], 1 }
 0x919   :  { %965 = vsyncpa [#allocation4 + $0x1], 1 }

// kernel: tpu_custom_call.1
= control target key start
LH: loop header
LB: loop body
LE: loop exit
PB: predicated region body
PF: predicated region fallthrough
CT: control target
= control target key end

     0   :  { %s1531_s0 = inlined_call_operand.vmem [shape: f32[16,32], index: 0, kind: input, shape index: {}]   ;;  %s1532_s1 = inlined_call_operand.vmem [shape: f32[1,32], index: 1, kind: input, shape index: {}]   ;;  %s1533_s2 = inlined_call_operand.vmem [shape: f32[1,32], index: 2, kind: input, shape index: {}]   ;;  %s1534_s3 = inlined_call_operand.vmem [shape: bf16[32,96], index: 3, kind: input, shape index: {}]   ;;  %s1535_s4 = inlined_call_operand.vmem [shape: bf16[32,32], index: 4, kind: input, shape index: {}]   ;;  %s1536_s5 = inlined_call_operand.vmem [shape: f32[1,32], index: 5, kind: input, shape index: {}]   ;;  %s1537_s6 = inlined_call_operand.vmem [shape: f32[1,32], index: 6, kind: input, shape index: {}]   ;;  %s1538_s7 = inlined_call_operand.vmem [shape: f32[1,32], index: 7, kind: input, shape index: {}]   ;;  %s1539_s8 = inlined_call_operand.vmem [shape: bf16[32,128], index: 8, kind: input, shape index: {}]   ;;  %s1540_s9 = inlined_call_operand.vmem [shape: f32[1,128], index: 9, kind: input, shape index: {}]   ;;  %s1541_s10 = inlined_call_operand.vmem [shape: bf16[128,32], index: 10, kind: input, shape index: {}]   ;;  %s1542_s11 = inlined_call_operand.vmem [shape: f32[1,32], index: 11, kind: input, shape index: {}]   ;;  %s1543_s12 = inlined_call_operand.hbm [shape: f32[16,32], index: 12, kind: output, shape index: {}]  }
   0x1   :  { %1544 = sst [smem:[#allocation6_spill]] %s1531_s0 }
   0x2   :  { %1545 = sst [smem:[#allocation7_spill]] %s1532_s1 }
   0x3   :  { %1546 = sst [smem:[#allocation8_spill]] %s1533_s2 }
   0x4   :  { %17 = vsyncpa [#allocation4], 0 }
   0x5   :  { %19 = vsyncpa [#allocation4 + $0x1], 0  ;;  %s1322_s21 = smov 0   ;;  %s1324_s22 = smov 0  }
   0x6   :  { %s1326_s23 = smov 0   ;;  %s1328_s24 = smov 0  }
   0x7 LB: > { %s1343_s25 = sadd.s32 4294967295, %s1240_s24   ;;  %s1004_s26 = sadd.s32 4294967294, %s1240_s24   ;;  %s1240_s24 = sphi %s1328_s24, %s1555_s24   ;;  %s1236_s23 = sphi %s1326_s23, %s1554_s23   ;;  %s1232_s22 = sphi %s1324_s22, %s1553_s22   ;;  %s1228_s21 = sphi %s1322_s21, %s1552_s21  }
   0x8   : > { %s1347_s27 = sadd.s32 1, %s1240_s24   ;;  %s289_s28 = sadd.s32 1, %s1236_s23 }
   0x9   : > { %s286_s29 = ssub.s32 %s1240_s24, %s1347_s27  ;;  %p299_p0 = scmp.ne.s32.totalorder %s1236_s23, %s1232_s22 }
   0xa   : > { %p287_p1 = scmp.eq.s32.totalorder %s286_s29, 0  ;;  %p300_p2 = scmp.eq.s32.totalorder %s1343_s25, 1 }
   0xb   : > { %p305_p3 = scmp.ne.s32.totalorder %s1232_s22, %s1228_s21  ;;  %p306_p4 = scmp.eq.s32.totalorder %s1004_s26, 1 }
   0xc   : > { %s1358_s30 = scalar_select %p287_p1, %s1236_s23, %s289_s28  }
   0xd   : > { %p1360_p5 = por %p300_p2, %p299_p0  ;;  %p1364_p6 = por %p306_p4, %p305_p3 }
   0xe   : > { %p1007_p7 = scmp.ge.s32.totalorder %s1240_s24, 1  ;;  %p364_p8 = scmp.lt.s32.totalorder %s1240_s24, 3 }
  0x10   : > { %p365_p9 = pnand %p1007_p7, %p364_p8 }
  0x11   : > { %p405_p10 = scmp.lt.s32.totalorder (!%p365_p9), %s1343_s25, 1  ;;  %s1549_s0 = sld [smem:[#allocation6_spill]] (!%p365_p9) }
  0x12   : > { %368 = sbr.rel (%p365_p9) target bundleno = 2314 (0x90a), region = 68  ;;  %s1550_s1 = sld [smem:[#allocation7_spill]] (!%p365_p9) }
  0x13   : > { %s1551_s2 = sld [smem:[#allocation8_spill]] (!%p365_p9)  ;;  %s1244_s20 = smov (!%p365_p9), 64  }
  0x14   : > { %s1245_s26 = smov (!%p365_p9), 96   ;;  %s1246_s28 = smov (!%p365_p9), 72  }
  0x15   : > { %s1247_s29 = smov (!%p365_p9), 80   ;;  %s1250_s17 = smov (!%p365_p9), 112  }
  0x16   : > { %s1251_s18 = smov (!%p365_p9), 40  }
  0x17   : > { %s406_s15 = scalar_select %p405_p10, %s1343_s25, 1  ;;  %vm413_vm0 = vcmask 261120   ;;  %v1242_v2 = vmov 32.0   ;;  %v1082_v14 = vld [vmem:[%s1534_s3 + $0x8] sm:$0xff]  ;;  %v1081_v15 = vld [vmem:[%s1534_s3] sm:$0xff]  ;;  %vm527_vm5 = vcmask 1043456  }
  0x18   : > { %1156 = vrcp.f32 %v1242_v2  ;;  %477 = vmatpush.bf16.msra.mxu0 %v1082_v14  ;;  %v1149_v25 = vld [vmem:[%s1550_s1] ss:$0 sm:$0xff]  ;;  %vm490_vm6 = vcmask 64512   ;;  %vm545_vm7 = vcmask 60416   ;;  %vm608_vm8 = vcmask 126016  }
  0x19   : > { %s1009_s16 = sshll.u32 %s406_s15, 3  ;;  %v1150_v28 = vld [vmem:[%s1551_s2] ss:$0 sm:$0xff]  ;;  %s1248_s15 = smov 120   ;;  %vm671_vm9 = vcmask 191616   ;;  %vm734_vm10 = vcmask 257216  }
  0x1a   : > { %s408_s19 = scalar_lea.vmem %s1549_s0, %s1009_s16  ;;  %s1249_s16 = smov 104  }
  0x1b   : > { %v1375_v0 = vld [vmem:[%s408_s19] sm:$0xff]  ;;  %s1243_s19 = smov 88  }
  0x1c   : > { %v414_v1 = vsel %vm413_vm0, %v1375_v0, 0.0  ;;  %478 = vmatpush.bf16.msra.mxu0 %v1081_v15 }
  0x1d   : > { %415 = vadd.xlane.f32.xlu0 %v414_v1 }
  0x1e   : > { %v1157_v3 = vpop.eup %1156 }
  0x1f   : > { %v418_v4 = vmul.f32 32.0, %v1157_v3  ;;  %vm422_vm1 = vweird.f32 %v1157_v3 }
  0x21   : > { %v419_v5 = vsub.f32 1.0, %v418_v4 }
  0x23   : > { %v420_v6 = vmul.f32 %v1157_v3, %v419_v5 }
  0x25   : > { %v421_v7 = vadd.f32 %v1157_v3, %v420_v6 }
  0x27   : > { %v1379_v8 = vsel %vm422_vm1, %v1157_v3, %v421_v7 }
  0x90   : > { %v416_v9 = vpop.xlane.xlu0 %415 }
  0x91   : > { %v424_v10 = vmul.f32 %v1379_v8, %v416_v9 }
  0x93   : > { %v425_v11 = vsub.f32 %v1375_v0, %v424_v10 }
  0x95   : > { %v426_v12 = vmul.f32 %v425_v11, %v425_v11 }
  0x97   : > { %v427_v13 = vsel %vm413_vm0, %v426_v12, 0.0 }
  0x98   : > { %428 = vadd.xlane.f32.xlu0 %v427_v13 }
 0x10b   : > { %v429_v16 = vpop.xlane.xlu0 %428 }
 0x10c   : > { %v430_v17 = vmul.f32 %v429_v16, %v1379_v8 }
 0x10e   : > { %v431_v18 = vadd.f32 1e-05, %v430_v17 }
 0x110   : > { %1158 = vrsqrt.f32 %v431_v18  ;;  %vm438_vm3 = vweird.f32 %v431_v18 }
 0x116   : > { %v1159_v19 = vpop.eup %1158 }
 0x117   : > { %v433_v20 = vmul.f32 %v1159_v19, %v431_v18  ;;  %vm439_vm2 = vweird.f32 %v1159_v19 }
 0x118   : > { %vm440_vm4 = vmor %vm438_vm3, %vm439_vm2 }
 0x119   : > { %v434_v21 = vmul.f32 %v1159_v19, %v433_v20 }
 0x11b   : > { %v435_v22 = vmul.f32 0.5, %v434_v21 }
 0x11d   : > { %v436_v23 = vsub.f32 1.5, %v435_v22 }
 0x11f   : > { %v437_v24 = vmul.f32 %v1159_v19, %v436_v23 }
 0x121   : > { %v441_v26 = vsel %vm440_vm4, %v1159_v19, %v437_v24 }
 0x122   : > { %v442_v27 = vmul.f32 %v441_v26, %v425_v11 }
 0x124   : > { %v446_v29 = vmul.f32 %v1149_v25, %v442_v27 }
 0x126   : > { %v450_v30 = vadd.f32 %v1150_v28, %v446_v29 }
 0x128   : > { %v451_v31 = vpack.c.bf16 %v450_v30, %v450_v30 }
 0x12a   : > { %1018 = vmatmul.msk.bf16.vlgmr.msra.gmra.mxu0 %vm413_vm0, %v451_v31 }
 0x1a7   : > { %v480_v32 = vpop.f32.mrf.mxu0 }
 0x1a8   : > { %v484_v33 = vpack.c.bf16 %v480_v32, %v480_v32 }
 0x1aa   : > { %v486_v34 = vunpack.c.l.b16 %v484_v33 }
 0x1ac   : > { %v1398_v35 = vpack.c.b16 %v486_v34, %v486_v34 }
 0x1ae   : > { %549 = vrot.lane.b32.xlu0 %v1398_v35, %s1243_s19  ;;  %522 = vrot.lane.b32.xlu2 %v1398_v35, %s1244_s20  ;;  %s1252_s19 = smov 48   ;;  %s1253_s20 = smov 56  }
 0x1af   : > { %488 = vrot.lane.b32.xlu1 %v1398_v35, %s1245_s26  ;;  %v482_v36 = vpop.f32.mrf.mxu0  ;;  %s1254_s26 = smov 16  }
 0x1b6   : > { %675 = vrot.lane.b32.xlu0 %v1398_v35, %s1246_s28  ;;  %s1255_s28 = smov 8  }
 0x1be   : > { %612 = vrot.lane.b32.xlu0 %v1398_v35, %s1247_s29  ;;  %s1256_s29 = smov 24  }
 0x208   : > { %v523_v37 = vpop.permute.xlu2 %522 }
 0x209   : > { %v529_v38 = vsel %vm527_vm5, %v523_v37, 0 }
 0x20a   : > { %538 = vmatpush.bf16.msra.mxu2 %v529_v38 }
 0x220   : > { %v550_v39 = vpop.permute.xlu0 %549 }
 0x221   : > { %v489_v40 = vpop.permute.xlu1 %488  ;;  %v555_v41 = vsel %vm490_vm6, %v550_v39, 0 }
 0x222   : > { %v495_v42 = vsel %vm490_vm6, %v489_v40, 0  ;;  %564 = vmatpush.bf16.xpose.msrb.mxu2 %v555_v41 }
 0x223   : > { %504 = vmatpush.bf16.xpose.msra.mxu1 %v495_v42 }
 0x228   : > { %v676_v43 = vpop.permute.xlu0 %675 }
 0x229   : > { %v681_v44 = vsel %vm490_vm6, %v676_v43, 0 }
 0x22a   : > { %1019 = vmatmul.msk.bf16.vlgmr.msra.gmra.mxu1 %vm490_vm6, %v484_v33  ;;  %690 = vmatpush.bf16.xpose.msra.mxu3 %v681_v44 }
 0x230   : > { %v613_v45 = vpop.permute.xlu0 %612 }
 0x231   : > { %v618_v46 = vsel %vm490_vm6, %v613_v45, 0 }
 0x232   : > { %627 = vmatpush.bf16.xpose.msrb.mxu0 %v618_v46 }
 0x2a7   : > { %v506_v47 = vpop.f32.mrf.mxu1 }
 0x2a8   : > { %v510_v48 = vsel %vm490_vm6, %v506_v47, -inf }
 0x2a9   : > { %511 = vmax.xlane.f32.xlu1 %v510_v48 }
 0x2af   : > { %v508_v49 = vpop.f32.mrf.mxu1 }
 0x31c   : > { %v512_v50 = vpop.xlane.xlu1 %511 }
 0x31d   : > { %v513_v51 = vsub.f32 %v506_v47, %v512_v50 }
 0x31f   : > { %v514_v52 = vmul.f32 1.442695, %v513_v51 }
 0x321   : > { %1160 = vpow2.f32 %v514_v52 }
 0x327   : > { %v1161_v53 = vpop.eup %1160 }
 0x328   : > { %v516_v54 = vsel %vm490_vm6, %v1161_v53, 0.0 }
 0x329   : > { %517 = vadd.xlane.f32.xlu2 %v516_v54  ;;  %v1084_v54 = vld [vmem:[%s1535_s4 + $0x8] sm:$0xff] }
 0x32a   : > { %766 = vmatpush.bf16.msra.mxu0 %v1084_v54 }
 0x341   : > { %547 = vrot.lane.b32.xlu2 %v1398_v35, %s1248_s15 }
 0x349   : > { %673 = vrot.lane.b32.xlu2 %v1398_v35, %s1249_s16 }
 0x351   : > { %610 = vrot.lane.b32.xlu2 %v1398_v35, %s1250_s17 }
 0x39c   : > { %v518_v55 = vpop.xlane.xlu2 %517 }
 0x39d   : > { %1162 = vrcp.f32 %v518_v55 }
 0x3a3   : > { %v1163_v56 = vpop.eup %1162 }
 0x3a4   : > { %v548_v57 = vpop.permute.xlu2 %547  ;;  %v520_v58 = vmul.f32 %v1163_v56, %v1161_v53 }
 0x3a6   : > { %v521_v59 = vpack.c.bf16 %v520_v58, %v520_v58 }
 0x3a8   : > { %1020 = vmatmul.msk.bf16.vlgmr.msra.gmra.mxu2 %vm490_vm6, %v521_v59 }
 0x3ac   : > { %v674_v60 = vpop.permute.xlu2 %673 }
 0x3ad   : > { %1025 = vmatmul.msk.bf16.vlgmr.msra.gmra.mxu3 %vm490_vm6, %v674_v60  ;;  %v1151_v60 = vld [vmem:[%s1536_s5] ss:$0 sm:$0xff] }
 0x3b4   : > { %v611_v61 = vpop.permute.xlu2 %610 }
 0x3b5   : > { %1023 = vmatmul.msk.bf16.vlgmr.msrb.gmra.mxu0 %vm490_vm6, %v611_v61 }
 0x3b8   : > { %1021 = vmatmul.msk.bf16.vlgmr.msrb.gmra.mxu2 %vm490_vm6, %v548_v57  ;;  %v1083_v57 = vld [vmem:[%s1535_s4] sm:$0xff] }
 0x3b9   : > { %767 = vmatpush.bf16.msra.mxu0 %v1083_v57 }
 0x42b   : > { %v540_v62 = vpop.f32.mrf.mxu2 }
 0x42c   : > { %v544_v63 = vpack.c.bf16 %v540_v62, %v540_v62 }
 0x42e   : > { %546 = vst.msk [vmem:[#allocation2] sm:$0xf] %vm545_vm7, %v544_v63 }
 0x430   : > { %v692_v1 = vpop.f32.mrf.mxu3 }
 0x431   : > { %v696_v2 = vsel %vm490_vm6, %v692_v1, -inf }
 0x432   : > { %697 = vmax.xlane.f32.xlu0 %v696_v2  ;;  %v629_v3 = vpop.f32.mrf.mxu0 }
 0x433   : > { %v542_v4 = vpop.f32.mrf.mxu2  ;;  %v633_v5 = vsel %vm490_vm6, %v629_v3, -inf }
 0x434   : > { %634 = vmax.xlane.f32.xlu2 %v633_v5 }
 0x438   : > { %v694_v6 = vpop.f32.mrf.mxu3 }
 0x43a   : > { %v631_v7 = vpop.f32.mrf.mxu0 }
 0x43b   : > { %v566_v9 = vpop.f32.mrf.mxu2 }
 0x43c   : > { %v570_v10 = vsel %vm490_vm6, %v566_v9, -inf }
 0x43d   : > { %571 = vmax.xlane.f32.xlu1 %v570_v10  ;;  %v1094_v10 = vld [vmem:[%s1541_s10 + $0x38] sm:$0xff] }
 0x43e   : > { %914 = vmatpush.bf16.msrb.mxu3 %v1094_v10 }
 0x443   : > { %v568_v11 = vpop.f32.mrf.mxu2 }
 0x44c   : > { %708 = vrot.lane.b32.xlu2 %v1398_v35, %s1251_s18 }
 0x4a5   : > { %v698_v22 = vpop.xlane.xlu0 %697 }
 0x4a6   : > { %v699_v23 = vsub.f32 %v692_v1, %v698_v22 }
 0x4a7   : > { %v635_v12 = vpop.xlane.xlu2 %634 }
 0x4a8   : > { %v636_v13 = vsub.f32 %v629_v3, %v635_v12  ;;  %v700_v24 = vmul.f32 1.442695, %v699_v23 }
 0x4aa   : > { %v637_v14 = vmul.f32 1.442695, %v636_v13  ;;  %v1093_v13 = vld [vmem:[%s1541_s10 + $0x30] sm:$0xff] }
 0x4ab   : > { %915 = vmatpush.bf16.msrb.mxu3 %v1093_v13 }
 0x4ac   : > { %1164 = vpow2.f32 %v637_v14 }
 0x4b0   : > { %v572_v15 = vpop.xlane.xlu1 %571 }
 0x4b1   : > { %v573_v16 = vsub.f32 %v566_v9, %v572_v15  ;;  %v1086_v9 = vld [vmem:[%s1539_s8 + $0x8] sm:$0xff] }
 0x4b2   : > { %v1165_v17 = vpop.eup %1164  ;;  %v1092_v15 = vld [vmem:[%s1541_s10 + $0x28] sm:$0xff] }
 0x4b3   : > { %v574_v18 = vmul.f32 1.442695, %v573_v16  ;;  %v639_v19 = vsel %vm490_vm6, %v1165_v17, 0.0  ;;  %916 = vmatpush.bf16.msrb.mxu3 %v1092_v15  ;;  %v1091_v16 = vld [vmem:[%s1541_s10 + $0x20] sm:$0xff] }
 0x4b4   : > { %640 = vadd.xlane.f32.xlu0 %v639_v19 }
 0x4b5   : > { %1166 = vpow2.f32 %v574_v18 }
 0x4b6   : > { %1168 = vpow2.f32 %v700_v24  ;;  %v1152_v24 = vld [vmem:[%s1537_s6] ss:$0 sm:$0xff] }
 0x4b7   : > { %917 = vmatpush.bf16.msrb.mxu3 %v1091_v16 }
 0x4bb   : > { %v1167_v20 = vpop.eup %1166 }
 0x4bc   : > { %v576_v21 = vsel %vm490_vm6, %v1167_v20, 0.0  ;;  %v1169_v25 = vpop.eup %1168 }
 0x4bd   : > { %577 = vadd.xlane.f32.xlu1 %v576_v21  ;;  %v702_v26 = vsel %vm490_vm6, %v1169_v25, 0.0  ;;  %v1089_v21 = vld [vmem:[%s1541_s10 + $0x10] sm:$0xff] }
 0x4c8   : > { %645 = vrot.lane.b32.xlu0 %v1398_v35, %s1252_s19 }
 0x4d6   : > { %582 = vrot.lane.b32.xlu1 %v1398_v35, %s1253_s20  ;;  %v709_v35 = vpop.permute.xlu2 %708  ;;  %s402_s20 = sand.u32 1, %s1232_s22  }
 0x4d7   : > { %v714_v39 = vsel %vm527_vm5, %v709_v35, 0 }
 0x500   : > { %703 = vadd.xlane.f32.xlu1 %v702_v26 }
 0x527   : > { %v641_v27 = vpop.xlane.xlu0 %640 }
 0x528   : > { %1170 = vrcp.f32 %v641_v27  ;;  %v1153_v27 = vld [vmem:[%s1538_s7] ss:$0 sm:$0xff] }
 0x52e   : > { %v1171_v28 = vpop.eup %1170 }
 0x52f   : > { %v643_v29 = vmul.f32 %v1171_v28, %v1165_v17 }
 0x530   : > { %v578_v31 = vpop.xlane.xlu1 %577 }
 0x531   : > { %v644_v33 = vpack.c.bf16 %v643_v29, %v643_v29  ;;  %1172 = vrcp.f32 %v578_v31  ;;  %v1088_v31 = vld [vmem:[%s1541_s10 + $0x8] sm:$0xff] }
 0x537   : > { %v1173_v34 = vpop.eup %1172 }
 0x538   : > { %v580_v36 = vmul.f32 %v1173_v34, %v1167_v20 }
 0x53a   : > { %v646_v30 = vpop.permute.xlu0 %645  ;;  %v581_v40 = vpack.c.bf16 %v580_v36, %v580_v36 }
 0x53b   : > { %v651_v32 = vsel %vm527_vm5, %v646_v30, 0 }
 0x53c   : > { %660 = vmatpush.bf16.msrb.mxu1 %v651_v32  ;;  %v1087_v32 = vld [vmem:[%s1541_s10] sm:$0xff] }
 0x53f   : > { %1024 = vmatmul.msk.bf16.vlgmr.msrb.gmra.mxu1 %vm490_vm6, %v644_v33  ;;  %v1154_v33 = vld [vmem:[%s1540_s9] ss:$0 sm:$0xff] }
 0x540   : > { %836 = vmatpush.bf16.msra.mxu1 %v1086_v9 }
 0x548   : > { %v583_v37 = vpop.permute.xlu1 %582 }
 0x549   : > { %v588_v38 = vsel %vm527_vm5, %v583_v37, 0 }
 0x54a   : > { %597 = vmatpush.bf16.msra.mxu2 %v588_v38 }
 0x54d   : > { %1022 = vmatmul.msk.bf16.vlgmr.msra.gmra.mxu2 %vm490_vm6, %v581_v40  ;;  %v1155_v40 = vld [vmem:[%s1542_s11] ss:$0 sm:$0xff] }
 0x54e   : > { %723 = vmatpush.bf16.msrb.mxu2 %v714_v39 }
 0x573   : > { %v704_v41 = vpop.xlane.xlu1 %703 }
 0x574   : > { %1174 = vrcp.f32 %v704_v41 }
 0x57a   : > { %v1175_v42 = vpop.eup %1174 }
 0x57b   : > { %v706_v43 = vmul.f32 %v1175_v42, %v1169_v25 }
 0x57d   : > { %v707_v44 = vpack.c.bf16 %v706_v43, %v706_v43 }
 0x57f   : > { %1026 = vmatmul.msk.bf16.vlgmr.msrb.gmra.mxu2 %vm490_vm6, %v707_v44 }
 0x5bc   : > { %v662_v45 = vpop.f32.mrf.mxu1 }
 0x5bd   : > { %v666_v46 = vpack.c.bf16 %v662_v45, %v662_v45 }
 0x5bf   : > { %668 = vrot.lane.b32.xlu0 %v666_v46, %s1254_s26  ;;  %s1008_s26 = sshll.u32 %s402_s20, 3 }
 0x5c0   : > { %s404_s19 = scalar_lea.vmem [#allocation3], %s1008_s26  ;;  %s1198_s26 = scalar_lea.hbm %s1543_s12, 16 }
 0x5c1   : > { %s942_s0 = sshll.u32 %s404_s19, 4  ;;  %s943_s0 = int_to_ptr.vmem [resolvable:$true] %s942_s0 }
 0x5c4   : > { %v664_v47 = vpop.f32.mrf.mxu1 }
 0x5d0   : > { %v599_v48 = vpop.f32.mrf.mxu2 }
 0x5d1   : > { %v603_v49 = vpack.c.bf16 %v599_v48, %v599_v48 }
 0x5d3   : > { %605 = vrot.lane.b32.xlu2 %v603_v49, %s1255_s28  ;;  %s1078_s28 = sshll.u32 %s1343_s25, 3  ;;  %s930_s25 = scalar_lea.sflag [#allocation4], %s402_s20 }
 0x5d4   : > { %s940_s18 = scalar_lea.hbm %s1543_s12, %s1078_s28 }
 0x5d5   : > { %s944_s1 = sshll.u32 %s940_s18, 4  ;;  %s945_s1 = int_to_ptr.hbm [resolvable:$true] %s944_s1 }
 0x5d6   : > { %s1192_s2 = sshra.s32 %s945_s1, 4  ;;  %s1193_s2 = int_to_ptr.hbm [resolvable:$true] %s1192_s2 }
 0x5d7   : > { %p1199_p0 = scmp.lt.s32.totalorder %s1193_s2, %s1543_s12 }
 0x5d8   : > { %v601_v50 = vpop.f32.mrf.mxu2 }
 0x602   : > { %v725_v51 = vpop.f32.mrf.mxu2 }
 0x603   : > { %v729_v52 = vpack.c.bf16 %v725_v51, %v725_v51 }
 0x605   : > { %731 = vrot.lane.b32.xlu2 %v729_v52, %s1256_s29  ;;  %s1194_s29 = scalar_lea.hbm %s1193_s2, 8 }
 0x606   : > { %p1195_p11 = scmp.ne.s32.totalorder %s1193_s2, %s1194_s29  ;;  %p1200_p1 = scmp.lt.s32.totalorder %s1198_s26, %s1194_s29 }
 0x608   : > { %p1196_p12 = pnand %p1195_p11, %p1360_p5  ;;  %p1201_p2 = por %p1200_p1, %p1199_p0 }
 0x60a   : > { %v727_v53 = vpop.f32.mrf.mxu2  ;;  %p1197_p13 = pneg %p1196_p12 }
 0x60c   : > { %p1202_p3 = pnand %p1201_p2, %p1197_p13 }
 0x62d   : > { %v606_v55 = vpop.permute.xlu2 %605 }
 0x62e   : > { %609 = vst.msk [vmem:[#allocation2] sm:$0xf] %vm608_vm8, %v606_v55 }
 0x631   : > { %v669_v56 = vpop.permute.xlu0 %668 }
 0x632   : > { %672 = vst.msk [vmem:[#allocation2] sm:$0xf] %vm671_vm9, %v669_v56 }
 0x65f   : > { %v732_v58 = vpop.permute.xlu2 %731 }
 0x660   : > { %735 = vst.msk [vmem:[#allocation2] sm:$0xf] %vm734_vm10, %v732_v58 }
 0x667   : > { %v736_v59 = vld [vmem:[#allocation2] sm:$0xf] }
 0x668   : > { %1035 = vmatmul.msk.bf16.vlgmr.msra.gmra.mxu0 %vm413_vm0, %v736_v59 }
 0x6e5   : > { %v769_v61 = vpop.f32.mrf.mxu0 }
 0x6e6   : > { %v770_v62 = vadd.f32 %v1151_v60, %v769_v61 }
 0x6e8   : > { %v1446_v63 = vadd.f32 %v770_v62, %v1375_v0  ;;  %v1085_v0 = vld [vmem:[%s1539_s8] sm:$0xff] }
 0x6e9   : > { %837 = vmatpush.bf16.msra.mxu1 %v1085_v0 }
 0x6ea   : > { %v776_v1 = vsel %vm413_vm0, %v1446_v63, 0.0 }
 0x6eb   : > { %777 = vadd.xlane.f32.xlu0 %v776_v1 }
 0x6ed   : > { %v771_v2 = vpop.f32.mrf.mxu0 }
 0x75e   : > { %v778_v3 = vpop.xlane.xlu0 %777 }
 0x75f   : > { %v779_v4 = vmul.f32 %v778_v3, %v1379_v8 }
 0x761   : > { %v780_v5 = vsub.f32 %v1446_v63, %v779_v4 }
 0x763   : > { %v781_v6 = vmul.f32 %v780_v5, %v780_v5 }
 0x765   : > { %v782_v7 = vsel %vm413_vm0, %v781_v6, 0.0 }
 0x766   : > { %783 = vadd.xlane.f32.xlu1 %v782_v7 }
 0x7d9   : > { %v784_v11 = vpop.xlane.xlu1 %783 }
 0x7da   : > { %v785_v12 = vmul.f32 %v784_v11, %v1379_v8  ;;  %v1090_v8 = vld [vmem:[%s1541_s10 + $0x18] sm:$0xff] }
 0x7db   : > { %918 = vmatpush.bf16.msrb.mxu3 %v1090_v8 }
 0x7dc   : > { %v786_v14 = vadd.f32 1e-05, %v785_v12 }
 0x7de   : > { %1176 = vrsqrt.f32 %v786_v14  ;;  %vm793_vm12 = vweird.f32 %v786_v14 }
 0x7df   : > { %919 = vmatpush.bf16.msrb.mxu3 %v1089_v21 }
 0x7e3   : > { %920 = vmatpush.bf16.msrb.mxu3 %v1088_v31 }
 0x7e4   : > { %v1177_v17 = vpop.eup %1176 }
 0x7e5   : > { %v788_v18 = vmul.f32 %v1177_v17, %v786_v14  ;;  %vm794_vm11 = vweird.f32 %v1177_v17 }
 0x7e6   : > { %vm795_vm13 = vmor %vm793_vm12, %vm794_vm11 }
 0x7e7   : > { %v789_v19 = vmul.f32 %v1177_v17, %v788_v18  ;;  %921 = vmatpush.bf16.msrb.mxu3 %v1087_v32 }
 0x7e9   : > { %v790_v20 = vmul.f32 0.5, %v789_v19 }
 0x7eb   : > { %v791_v22 = vsub.f32 1.5, %v790_v20 }
 0x7ed   : > { %v792_v23 = vmul.f32 %v1177_v17, %v791_v22 }
 0x7ef   : > { %v796_v25 = vsel %vm795_vm13, %v1177_v17, %v792_v23 }
 0x7f0   : > { %v797_v26 = vmul.f32 %v796_v25, %v780_v5 }
 0x7f2   : > { %v801_v28 = vmul.f32 %v1152_v24, %v797_v26 }
 0x7f4   : > { %v805_v29 = vadd.f32 %v1153_v27, %v801_v28 }
 0x7f6   : > { %v806_v30 = vpack.c.bf16 %v805_v29, %v805_v29 }
 0x7f8   : > { %1044 = vmatmul.msk.bf16.vlgmr.msra.gmra.mxu1 %vm413_vm0, %v806_v30 }
 0x875   : > { %v839_v34 = vpop.f32.mrf.mxu1 }
 0x876   : > { %v840_v35 = vadd.f32 %v1154_v33, %v839_v34 }
 0x878   : > { %v843_v36 = vmax.f32 %v840_v35, 0.0 }
 0x87a   : > { %v844_v37 = vmin.f32 %v843_v36, 6.0 }
 0x87c   : > { %v845_v38 = vpack.c.bf16 %v844_v37, %v844_v37 }
 0x87d   : > { %v841_v39 = vpop.f32.mrf.mxu1 }
 0x87e   : > { %922 = vmatmul.bf16.vlgmr.msrb.gmra.mxu3 %v845_v38 }
 0x901   : > { %v923_v41 = vpop.f32.mrf.mxu3 }
 0x902   : > { %v924_v42 = vadd.f32 %v1155_v40, %v923_v41 }
 0x904   : > { %v927_v43 = vadd.f32 %v924_v42, %v1446_v63 }
 0x906   : > { %928 = vst.msk [vmem:[%s404_s19] sm:$0xff] %vm413_vm0, %v927_v43 }
 0x907   : > { %1205 = shalt.err (!%p1202_p3)
}
 0x908   : > { %1095 = dma.vmem_to_hbm [thread:$0]  (%p1360_p5), %s943_s0, 128, %s945_s1, %s930_s25  }
 0x909   : > { %v925_v44 = vpop.f32.mrf.mxu3 }
 0x90a PF: > { %p1101_p4 = scmp.ge.s32.totalorder %s1240_s24, 2  ;;  %s956_s20 = sand.u32 1, %s1228_s21  }
 0x90b   : > { %s957_s18 = scalar_lea.sflag [#allocation4], %s956_s20 }
 0x90c   : > { %p1098_p7 = pnand %p1101_p4, %p1364_p6 }
 0x90e   : > { %p1099_p8 = pneg %p1098_p7 }
 0x910   : > { %1223 = dma.done.wait (%p1099_p8), %s957_s18, 128  }
 0x911   : > { %1225 = vsyncadd (%p1099_p8), %s957_s18, 4294967168  ;;  %p22_p9 = scmp.ge.s32.totalorder %s1347_s27, 4   ;;  %s1552_s21 = smov %s1232_s22 }
 0x912   : > { %s1553_s22 = smov %s1236_s23  ;;  %s1554_s23 = smov %s1358_s30 }
 0x913   : > { %s1555_s24 = smov %s1347_s27  ;;  %24 = sbr.rel (!%p22_p9) target bundleno = 7 (0x7), region = 103 }
 0x918   :  { %963 = vsyncpa [#allocation4], 1 }
 0x919   :  { %965 = vsyncpa [#allocation4 + $0x1], 1 }

</bundles_post_ra>
